<compile_context>
chip_gen: v7x
topology: tpu7x:2x2x1
jax: 0.10.0
libtpu: 0.0.40
codegen_flags: <defaults>
</compile_context>

<pallas_src>
import functools

import jax
import jax.numpy as jnp
from jax import lax
from jax.experimental import pallas as pl
from jax.experimental.pallas import tpu as pltpu


# ----------------------------------------------------------------------------
# Fused Pallas kernel: whole GroupOfResidualDenseBlock for one image per step.
# ----------------------------------------------------------------------------
def _fused_grdb_kernel(*args, block_config, H, W, mm_dtype):
    # args = (x_ref, *weight_refs, o_ref, pad_ref)
    x_ref = args[0]
    w_refs = args[1:-2]
    o_ref = args[-2]
    pad_ref = args[-1]                       # (Cb, HW + 2W + 2) VMEM scratch
    HW = H * W

    def mm(w, x):
        # (Cout, Cin) @ (Cin, HW) on the MXU: lane-dense output, f32 accumulate.
        return jnp.dot(w.astype(mm_dtype), x.astype(mm_dtype),
                       preferred_element_type=jnp.float32)

    # Column index of every flattened spatial position (hoisted; reused by all
    # 3x3 convs for the left/right edge masks).
    col = lax.broadcasted_iota(jnp.int32, (1, HW), 1) % W
    not_first_col = col != 0                 # valid for taps reading (w - 1)
    not_last_col = col != (W - 1)            # valid for taps reading (w + 1)

    # Zero the padded scratch once: only its interior is ever rewritten, so the
    # implicit 1-pixel zero border (rows above/below) stays valid for all layers.
    pad_ref[...] = jnp.zeros(pad_ref.shape, pad_ref.dtype)

    def conv3x3(w_flat, x_relu):
        # x_relu: (Cb, HW) already ReLU'ed.  w_flat: (Cout, 9*Cb) with tap-major
        # ((dy*3+dx)*Cb + ci) ordering.  conv(k=3, stride=1, pad=1, no bias).
        pad_ref[:, W + 1:W + 1 + HW] = x_relu          # interior of padded image
        patches = []
        for dy in range(3):
            for dx in range(3):
                start = dy * W + dx                    # tap (dy-1, dx-1)
                p = pad_ref[:, start:start + HW]
                if dx == 0:                            # reads column (w - 1)
                    p = jnp.where(not_first_col, p, 0.0)
                elif dx == 2:                          # reads column (w + 1)
                    p = jnp.where(not_last_col, p, 0.0)
                patches.append(p)
        im2col = jnp.concatenate(patches, axis=0)      # (9*Cb, HW), in VMEM
        return mm(w_flat, im2col)

    x = x_ref[...].astype(jnp.float32)                 # (C_in, HW)

    widx = 0
    group_feats = []
    new = x
    for num_layers in block_config:                    # _ResidualDenseBlock
        init = new
        feats = init                                   # running dense concat (C, HW)
        for _ in range(num_layers):                    # _DenseLayer
            w1 = w_refs[widx][...]
            w2 = w_refs[widx + 1][...]
            widx += 2
            bottleneck = mm(w1, jnp.maximum(feats, 0.0))        # relu1 -> conv1 (1x1)
            new_f = conv3x3(w2, jnp.maximum(bottleneck, 0.0))   # relu2 -> conv2 (3x3)
            feats = jnp.concatenate([feats, new_f], axis=0)     # VMEM-local concat
        w_blk = w_refs[widx][...]
        widx += 1
        new = init + mm(w_blk, feats)                  # '1x1conv' + residual (fused)
        group_feats.append(new)

    w_grp = w_refs[widx][...]
    cat = jnp.concatenate(group_feats, axis=0)
    out = x + mm(w_grp, cat)                           # 'group_1x1conv' + residual
    o_ref[...] = out.astype(o_ref.dtype)


# ----------------------------------------------------------------------------
# Wrapper: NCHW in / NCHW out, PyTorch-shaped (OIHW) weights.
# ----------------------------------------------------------------------------
def group_of_rdb_forward(x_nchw, params, *, matmul_dtype=jnp.float32):
    N, C, H, W = x_nchw.shape
    HW = H * W
    x_flat = x_nchw.reshape(N, C, HW)        # NCHW -> (N, C, H*W): free reshape

    block_config = tuple(len(b["layers"]) for b in params["blocks"])
    cb = params["blocks"][0]["layers"][0]["w2"].shape[1]   # = bn_size * growth

    # Flatten conv weights into matmul form (tiny host/XLA-side glue).
    flat_ws = []
    for block in params["blocks"]:
        for lyr in block["layers"]:
            w1 = lyr["w1"]                                   # (Cout, Cin, 1, 1)
            flat_ws.append(w1.reshape(w1.shape[0], w1.shape[1]))
            w2 = lyr["w2"]                                   # (Cout, Cin, 3, 3) OIHW
            flat_ws.append(
                jnp.transpose(w2, (0, 2, 3, 1)).reshape(w2.shape[0], -1))
        wb = block["w_1x1"]                                  # (C, nch, 1, 1)
        flat_ws.append(wb.reshape(wb.shape[0], wb.shape[1]))
    wg = params["w_group"]                                   # (C_out, C*nblk, 1, 1)
    flat_ws.append(wg.reshape(wg.shape[0], wg.shape[1]))
    flat_ws = [w.astype(matmul_dtype) for w in flat_ws]      # bf16 halves weight HBM bytes
    c_out = wg.shape[0]

    kernel = functools.partial(_fused_grdb_kernel, block_config=block_config,
                               H=H, W=W, mm_dtype=matmul_dtype)

    in_specs = [pl.BlockSpec((None, C, HW), lambda n: (n, 0, 0))]
    in_specs += [pl.BlockSpec(w.shape, lambda n: (0, 0)) for w in flat_ws]

    out_flat = pl.pallas_call(
        kernel,
        out_shape=jax.ShapeDtypeStruct((N, c_out, HW), jnp.float32),
        grid=(N,),
        in_specs=in_specs,
        out_specs=pl.BlockSpec((None, c_out, HW), lambda n: (n, 0, 0)),
        scratch_shapes=[pltpu.VMEM((cb, HW + 2 * W + 2), jnp.float32)],
        compiler_params=pltpu.CompilerParams(dimension_semantics=("parallel",)),
    )(x_flat, *flat_ws)
    return out_flat.reshape(N, c_out, H, W)


# ----------------------------------------------------------------------------
# Pure-JAX reference (NCHW + lax conv), mirroring the PyTorch module exactly.
# ----------------------------------------------------------------------------
def ref_forward(x, params):
    def conv(t, w, pad):
        return lax.conv_general_dilated(
            t, w, window_strides=(1, 1), padding=[(pad, pad), (pad, pad)],
            dimension_numbers=("NCHW", "OIHW", "NCHW"),
            precision=lax.Precision.HIGHEST)

    relu = lambda t: jnp.maximum(t, 0.0)
    group_feats = []
    new = x
    for block in params["blocks"]:
        init = new
        feats = [init]
        for lyr in block["layers"]:
            cat = jnp.concatenate(feats, axis=1)
            bottleneck = conv(relu(cat), lyr["w1"], 0)
            feats.append(conv(relu(bottleneck), lyr["w2"], 1))
        cat = jnp.concatenate(feats, axis=1)
        new = init + conv(cat, block["w_1x1"], 0)
        group_feats.append(new)
    cat = jnp.concatenate(group_feats, axis=1)
    return x + conv(cat, params["w_group"], 0)


# ----------------------------------------------------------------------------
# Deterministic synthetic parameters (PyTorch OIHW conv-weight shapes).
# ----------------------------------------------------------------------------
def init_params(key, num_in, num_out, bn_size, growth, block_config):
    params = {"blocks": []}
    for num_layers in block_config:
        block = {"layers": []}
        nch = num_in
        for _ in range(num_layers):
            key, k1, k2 = jax.random.split(key, 3)
            block["layers"].append({
                "w1": 0.05 * jax.random.normal(k1, (bn_size * growth, nch, 1, 1), jnp.float32),
                "w2": 0.05 * jax.random.normal(k2, (growth, bn_size * growth, 3, 3), jnp.float32),
            })
            nch += growth
        key, k3 = jax.random.split(key)
        block["w_1x1"] = 0.05 * jax.random.normal(k3, (num_in, nch, 1, 1), jnp.float32)
        params["blocks"].append(block)
    key, k4 = jax.random.split(key)
    params["w_group"] = 0.05 * jax.random.normal(
        k4, (num_out, num_in * len(block_config), 1, 1), jnp.float32)
    return params


if __name__ == "__main__":
    # Small config consistent with the module's constructor arguments.
    N, C, H, W = 2, 8, 16, 16
    num_input_channel = C
    num_output_channel = C          # residual add requires out == in channels
    bn_size = 2
    growth_rate = 8
    block_config = (2, 2)

    key = jax.random.PRNGKey(0)
    key, kx, kp = jax.random.split(key, 3)
    x = jax.random.normal(kx, (N, C, H, W), jnp.float32)   # NCHW, as in PyTorch
    params = init_params(kp, num_input_channel, num_output_channel,
                         bn_size, growth_rate, block_config)

    out_ref = jax.block_until_ready(ref_forward(x, params))

    fwd = jax.jit(group_of_rdb_forward, static_argnames=("matmul_dtype",))

    # f32 matmul operands: tight check against the high-precision reference.
    out = jax.block_until_ready(fwd(x, params, matmul_dtype=jnp.float32))
    assert out.shape == (N, num_output_channel, H, W)
    assert jnp.allclose(out, out_ref, atol=1e-3, rtol=1e-3), "Pallas f32 mismatch"

    # bf16 matmul operands (v6e/v7x MXU rate), f32 accumulation: loose check.
    out_bf16 = jax.block_until_ready(fwd(x, params, matmul_dtype=jnp.bfloat16))
    assert jnp.max(jnp.abs(out_bf16 - out_ref)) < 1e-1, "Pallas bf16 mismatch"

    print("KERNEL_OK")
</pallas_src>

<mosaic_0001>
module attributes {stable_mosaic.version = 11 : i64} {
  func.func @_fused_grdb_kernel(%arg0: i32, %arg1: memref<1x8x256xf32, #tpu.memory_space<vmem>>, %arg2: memref<16x8xf32, #tpu.memory_space<vmem>>, %arg3: memref<8x144xf32, #tpu.memory_space<vmem>>, %arg4: memref<16x16xf32, #tpu.memory_space<vmem>>, %arg5: memref<8x144xf32, #tpu.memory_space<vmem>>, %arg6: memref<8x24xf32, #tpu.memory_space<vmem>>, %arg7: memref<16x8xf32, #tpu.memory_space<vmem>>, %arg8: memref<8x144xf32, #tpu.memory_space<vmem>>, %arg9: memref<16x16xf32, #tpu.memory_space<vmem>>, %arg10: memref<8x144xf32, #tpu.memory_space<vmem>>, %arg11: memref<8x24xf32, #tpu.memory_space<vmem>>, %arg12: memref<8x16xf32, #tpu.memory_space<vmem>>, %arg13: memref<1x8x256xf32, #tpu.memory_space<vmem>>, %arg14: memref<16x290xf32, #tpu.memory_space<vmem>>) attributes {dimension_semantics = [#tpu.dimension_semantics<parallel>], iteration_bounds = array<i64: 2>, scalar_prefetch = 0 : i64, scratch_operands = 1 : i64, tpu.core_type = #tpu.core_type<tc>, window_params = [{transform_indices = @transform_0, window_bounds = array<i64: 1, 8, 256>}, {pipeline_mode = #tpu.pipeline_mode<synchronous>, transform_indices = @transform_1, window_bounds = array<i64: 16, 8>}, {pipeline_mode = #tpu.pipeline_mode<synchronous>, transform_indices = @transform_2, window_bounds = array<i64: 8, 144>}, {pipeline_mode = #tpu.pipeline_mode<synchronous>, transform_indices = @transform_3, window_bounds = array<i64: 16, 16>}, {pipeline_mode = #tpu.pipeline_mode<synchronous>, transform_indices = @transform_4, window_bounds = array<i64: 8, 144>}, {pipeline_mode = #tpu.pipeline_mode<synchronous>, transform_indices = @transform_5, window_bounds = array<i64: 8, 24>}, {pipeline_mode = #tpu.pipeline_mode<synchronous>, transform_indices = @transform_6, window_bounds = array<i64: 16, 8>}, {pipeline_mode = #tpu.pipeline_mode<synchronous>, transform_indices = @transform_7, window_bounds = array<i64: 8, 144>}, {pipeline_mode = #tpu.pipeline_mode<synchronous>, transform_indices = @transform_8, window_bounds = array<i64: 16, 16>}, {pipeline_mode = #tpu.pipeline_mode<synchronous>, transform_indices = @transform_9, window_bounds = array<i64: 8, 144>}, {pipeline_mode = #tpu.pipeline_mode<synchronous>, transform_indices = @transform_10, window_bounds = array<i64: 8, 24>}, {pipeline_mode = #tpu.pipeline_mode<synchronous>, transform_indices = @transform_11, window_bounds = array<i64: 8, 16>}, {transform_indices = @transform_12, window_bounds = array<i64: 1, 8, 256>}]} {
    %0 = tpu.iota {dimensions = array<i32: 1>} : vector<1x256xi32>
    %c16_i32 = arith.constant 16 : i32
    %c0_i32 = arith.constant 0 : i32
    %1 = arith.cmpi eq, %c16_i32, %c0_i32 : i32
    %c1_i32 = arith.constant 1 : i32
    %2 = arith.select %1, %c1_i32, %c16_i32 : i32
    %3 = vector.broadcast %2 : i32 to vector<1x256xi32>
    %4 = arith.remsi %0, %3 : vector<1x256xi32>
    %c0_i32_0 = arith.constant 0 : i32
    %5 = vector.broadcast %c0_i32_0 : i32 to vector<1x256xi32>
    %6 = arith.cmpi ne, %4, %5 : vector<1x256xi32>
    %c0_i32_1 = arith.constant 0 : i32
    %7 = vector.broadcast %c0_i32_1 : i32 to vector<1x256xi32>
    %8 = arith.cmpi slt, %4, %7 : vector<1x256xi32>
    %c0_i32_2 = arith.constant 0 : i32
    %9 = arith.cmpi slt, %2, %c0_i32_2 : i32
    %10 = vector.broadcast %9 : i1 to vector<1x256xi1>
    %11 = vector.broadcast %10 : vector<1x256xi1> to vector<1x256xi1>
    %12 = arith.xori %8, %11 : vector<1x256xi1>
    %13 = arith.andi %12, %6 : vector<1x256xi1>
    %14 = vector.broadcast %2 : i32 to vector<1x256xi32>
    %15 = arith.addi %4, %14 : vector<1x256xi32>
    %16 = arith.select %13, %15, %4 : vector<1x256xi1>, vector<1x256xi32>
    %c0_i32_3 = arith.constant 0 : i32
    %17 = vector.broadcast %c0_i32_3 : i32 to vector<1x256xi32>
    %18 = arith.cmpi ne, %16, %17 : vector<1x256xi32>
    %c15_i32 = arith.constant 15 : i32
    %19 = vector.broadcast %c15_i32 : i32 to vector<1x256xi32>
    %20 = arith.cmpi ne, %16, %19 : vector<1x256xi32>
    %cst = arith.constant 0.000000e+00 : f32
    %21 = vector.broadcast %cst : f32 to vector<16x290xf32>
    %c0 = arith.constant 0 : index
    %c0_4 = arith.constant 0 : index
    %22 = vector.load %arg14[%c0, %c0_4] : memref<16x290xf32, #tpu.memory_space<vmem>>, vector<16x290xf32>
    tpu.vector_store %arg14[%c0, %c0_4], %21 {strides = array<i32>} : memref<16x290xf32, #tpu.memory_space<vmem>>, vector<16x290xf32>,
    %c0_5 = arith.constant 0 : index
    %c0_6 = arith.constant 0 : index
    %c0_7 = arith.constant 0 : index
    %23 = vector.load %arg1[%c0_5, %c0_6, %c0_7] : memref<1x8x256xf32, #tpu.memory_space<vmem>>, vector<1x8x256xf32>
    %24 = vector.shape_cast %23 : vector<1x8x256xf32> to vector<8x256xf32>
    %c0_8 = arith.constant 0 : index
    %c0_9 = arith.constant 0 : index
    %25 = vector.load %arg2[%c0_8, %c0_9] : memref<16x8xf32, #tpu.memory_space<vmem>>, vector<16x8xf32>
    %c0_10 = arith.constant 0 : index
    %c0_11 = arith.constant 0 : index
    %26 = vector.load %arg3[%c0_10, %c0_11] : memref<8x144xf32, #tpu.memory_space<vmem>>, vector<8x144xf32>
    %cst_12 = arith.constant 0.000000e+00 : f32
    %27 = vector.broadcast %cst_12 : f32 to vector<8x256xf32>
    %28 = arith.maximumf %24, %27 : vector<8x256xf32>
    %cst_13 = arith.constant dense<0.000000e+00> : vector<16x256xf32>
    %29 = tpu.matmul %25, %28, %cst_13 {dimension_numbers = #tpu.dot_dimension_numbers<[1], [0], [0], [1], [0, 0, 1, 1], [], []>} : vector<16x8xf32>, vector<8x256xf32>, vector<16x256xf32> -> vector<16x256xf32>
    %cst_14 = arith.constant 0.000000e+00 : f32
    %30 = vector.broadcast %cst_14 : f32 to vector<16x256xf32>
    %31 = arith.maximumf %29, %30 : vector<16x256xf32>
    %c0_15 = arith.constant 0 : index
    %c17 = arith.constant 17 : index
    %32 = vector.load %arg14[%c0_15, %c17] : memref<16x290xf32, #tpu.memory_space<vmem>>, vector<16x256xf32>
    tpu.vector_store %arg14[%c0_15, %c17], %31 {strides = array<i32>} : memref<16x290xf32, #tpu.memory_space<vmem>>, vector<16x256xf32>,
    %c0_16 = arith.constant 0 : index
    %c0_17 = arith.constant 0 : index
    %33 = vector.load %arg14[%c0_16, %c0_17] : memref<16x290xf32, #tpu.memory_space<vmem>>, vector<16x256xf32>
    %cst_18 = arith.constant 0.000000e+00 : f32
    %34 = vector.shape_cast %18 : vector<1x256xi1> to vector<1x256xi1>
    %35 = vector.broadcast %34 : vector<1x256xi1> to vector<16x256xi1>
    %36 = vector.broadcast %cst_18 : f32 to vector<16x256xf32>
    %37 = arith.select %35, %33, %36 : vector<16x256xi1>, vector<16x256xf32>
    %c0_19 = arith.constant 0 : index
    %c1 = arith.constant 1 : index
    %38 = vector.load %arg14[%c0_19, %c1] : memref<16x290xf32, #tpu.memory_space<vmem>>, vector<16x256xf32>
    %c0_20 = arith.constant 0 : index
    %c2 = arith.constant 2 : index
    %39 = vector.load %arg14[%c0_20, %c2] : memref<16x290xf32, #tpu.memory_space<vmem>>, vector<16x256xf32>
    %cst_21 = arith.constant 0.000000e+00 : f32
    %40 = vector.shape_cast %20 : vector<1x256xi1> to vector<1x256xi1>
    %41 = vector.broadcast %40 : vector<1x256xi1> to vector<16x256xi1>
    %42 = vector.broadcast %cst_21 : f32 to vector<16x256xf32>
    %43 = arith.select %41, %39, %42 : vector<16x256xi1>, vector<16x256xf32>
    %c0_22 = arith.constant 0 : index
    %c16 = arith.constant 16 : index
    %44 = vector.load %arg14[%c0_22, %c16] : memref<16x290xf32, #tpu.memory_space<vmem>>, vector<16x256xf32>
    %cst_23 = arith.constant 0.000000e+00 : f32
    %45 = vector.shape_cast %18 : vector<1x256xi1> to vector<1x256xi1>
    %46 = vector.broadcast %45 : vector<1x256xi1> to vector<16x256xi1>
    %47 = vector.broadcast %cst_23 : f32 to vector<16x256xf32>
    %48 = arith.select %46, %44, %47 : vector<16x256xi1>, vector<16x256xf32>
    %c0_24 = arith.constant 0 : index
    %c17_25 = arith.constant 17 : index
    %49 = vector.load %arg14[%c0_24, %c17_25] : memref<16x290xf32, #tpu.memory_space<vmem>>, vector<16x256xf32>
    %c0_26 = arith.constant 0 : index
    %c18 = arith.constant 18 : index
    %50 = vector.load %arg14[%c0_26, %c18] : memref<16x290xf32, #tpu.memory_space<vmem>>, vector<16x256xf32>
    %cst_27 = arith.constant 0.000000e+00 : f32
    %51 = vector.shape_cast %20 : vector<1x256xi1> to vector<1x256xi1>
    %52 = vector.broadcast %51 : vector<1x256xi1> to vector<16x256xi1>
    %53 = vector.broadcast %cst_27 : f32 to vector<16x256xf32>
    %54 = arith.select %52, %50, %53 : vector<16x256xi1>, vector<16x256xf32>
    %c0_28 = arith.constant 0 : index
    %c32 = arith.constant 32 : index
    %55 = vector.load %arg14[%c0_28, %c32] : memref<16x290xf32, #tpu.memory_space<vmem>>, vector<16x256xf32>
    %cst_29 = arith.constant 0.000000e+00 : f32
    %56 = vector.shape_cast %18 : vector<1x256xi1> to vector<1x256xi1>
    %57 = vector.broadcast %56 : vector<1x256xi1> to vector<16x256xi1>
    %58 = vector.broadcast %cst_29 : f32 to vector<16x256xf32>
    %59 = arith.select %57, %55, %58 : vector<16x256xi1>, vector<16x256xf32>
    %c0_30 = arith.constant 0 : index
    %c33 = arith.constant 33 : index
    %60 = vector.load %arg14[%c0_30, %c33] : memref<16x290xf32, #tpu.memory_space<vmem>>, vector<16x256xf32>
    %c0_31 = arith.constant 0 : index
    %c34 = arith.constant 34 : index
    %61 = vector.load %arg14[%c0_31, %c34] : memref<16x290xf32, #tpu.memory_space<vmem>>, vector<16x256xf32>
    %cst_32 = arith.constant 0.000000e+00 : f32
    %62 = vector.shape_cast %20 : vector<1x256xi1> to vector<1x256xi1>
    %63 = vector.broadcast %62 : vector<1x256xi1> to vector<16x256xi1>
    %64 = vector.broadcast %cst_32 : f32 to vector<16x256xf32>
    %65 = arith.select %63, %61, %64 : vector<16x256xi1>, vector<16x256xf32>
    %66 = tpu.concatenate %37, %38, %43, %48, %49, %54, %59, %60, %65 in 0 : vector<16x256xf32>, vector<16x256xf32>, vector<16x256xf32>, vector<16x256xf32>, vector<16x256xf32>, vector<16x256xf32>, vector<16x256xf32>, vector<16x256xf32>, vector<16x256xf32> -> vector<144x256xf32>
    %cst_33 = arith.constant dense<0.000000e+00> : vector<8x256xf32>
    %67 = tpu.matmul %26, %66, %cst_33 {dimension_numbers = #tpu.dot_dimension_numbers<[1], [0], [0], [1], [0, 0, 1, 1], [], []>} : vector<8x144xf32>, vector<144x256xf32>, vector<8x256xf32> -> vector<8x256xf32>
    %68 = tpu.concatenate %24, %67 in 0 : vector<8x256xf32>, vector<8x256xf32> -> vector<16x256xf32>
    %c0_34 = arith.constant 0 : index
    %c0_35 = arith.constant 0 : index
    %69 = vector.load %arg4[%c0_34, %c0_35] : memref<16x16xf32, #tpu.memory_space<vmem>>, vector<16x16xf32>
    %c0_36 = arith.constant 0 : index
    %c0_37 = arith.constant 0 : index
    %70 = vector.load %arg5[%c0_36, %c0_37] : memref<8x144xf32, #tpu.memory_space<vmem>>, vector<8x144xf32>
    %cst_38 = arith.constant 0.000000e+00 : f32
    %71 = vector.broadcast %cst_38 : f32 to vector<16x256xf32>
    %72 = arith.maximumf %68, %71 : vector<16x256xf32>
    %cst_39 = arith.constant dense<0.000000e+00> : vector<16x256xf32>
    %73 = tpu.matmul %69, %72, %cst_39 {dimension_numbers = #tpu.dot_dimension_numbers<[1], [0], [0], [1], [0, 0, 1, 1], [], []>} : vector<16x16xf32>, vector<16x256xf32>, vector<16x256xf32> -> vector<16x256xf32>
    %cst_40 = arith.constant 0.000000e+00 : f32
    %74 = vector.broadcast %cst_40 : f32 to vector<16x256xf32>
    %75 = arith.maximumf %73, %74 : vector<16x256xf32>
    %c0_41 = arith.constant 0 : index
    %c17_42 = arith.constant 17 : index
    %76 = vector.load %arg14[%c0_41, %c17_42] : memref<16x290xf32, #tpu.memory_space<vmem>>, vector<16x256xf32>
    tpu.vector_store %arg14[%c0_41, %c17_42], %75 {strides = array<i32>} : memref<16x290xf32, #tpu.memory_space<vmem>>, vector<16x256xf32>,
    %c0_43 = arith.constant 0 : index
    %c0_44 = arith.constant 0 : index
    %77 = vector.load %arg14[%c0_43, %c0_44] : memref<16x290xf32, #tpu.memory_space<vmem>>, vector<16x256xf32>
    %cst_45 = arith.constant 0.000000e+00 : f32
    %78 = vector.shape_cast %18 : vector<1x256xi1> to vector<1x256xi1>
    %79 = vector.broadcast %78 : vector<1x256xi1> to vector<16x256xi1>
    %80 = vector.broadcast %cst_45 : f32 to vector<16x256xf32>
    %81 = arith.select %79, %77, %80 : vector<16x256xi1>, vector<16x256xf32>
    %c0_46 = arith.constant 0 : index
    %c1_47 = arith.constant 1 : index
    %82 = vector.load %arg14[%c0_46, %c1_47] : memref<16x290xf32, #tpu.memory_space<vmem>>, vector<16x256xf32>
    %c0_48 = arith.constant 0 : index
    %c2_49 = arith.constant 2 : index
    %83 = vector.load %arg14[%c0_48, %c2_49] : memref<16x290xf32, #tpu.memory_space<vmem>>, vector<16x256xf32>
    %cst_50 = arith.constant 0.000000e+00 : f32
    %84 = vector.shape_cast %20 : vector<1x256xi1> to vector<1x256xi1>
    %85 = vector.broadcast %84 : vector<1x256xi1> to vector<16x256xi1>
    %86 = vector.broadcast %cst_50 : f32 to vector<16x256xf32>
    %87 = arith.select %85, %83, %86 : vector<16x256xi1>, vector<16x256xf32>
    %c0_51 = arith.constant 0 : index
    %c16_52 = arith.constant 16 : index
    %88 = vector.load %arg14[%c0_51, %c16_52] : memref<16x290xf32, #tpu.memory_space<vmem>>, vector<16x256xf32>
    %cst_53 = arith.constant 0.000000e+00 : f32
    %89 = vector.shape_cast %18 : vector<1x256xi1> to vector<1x256xi1>
    %90 = vector.broadcast %89 : vector<1x256xi1> to vector<16x256xi1>
    %91 = vector.broadcast %cst_53 : f32 to vector<16x256xf32>
    %92 = arith.select %90, %88, %91 : vector<16x256xi1>, vector<16x256xf32>
    %c0_54 = arith.constant 0 : index
    %c17_55 = arith.constant 17 : index
    %93 = vector.load %arg14[%c0_54, %c17_55] : memref<16x290xf32, #tpu.memory_space<vmem>>, vector<16x256xf32>
    %c0_56 = arith.constant 0 : index
    %c18_57 = arith.constant 18 : index
    %94 = vector.load %arg14[%c0_56, %c18_57] : memref<16x290xf32, #tpu.memory_space<vmem>>, vector<16x256xf32>
    %cst_58 = arith.constant 0.000000e+00 : f32
    %95 = vector.shape_cast %20 : vector<1x256xi1> to vector<1x256xi1>
    %96 = vector.broadcast %95 : vector<1x256xi1> to vector<16x256xi1>
    %97 = vector.broadcast %cst_58 : f32 to vector<16x256xf32>
    %98 = arith.select %96, %94, %97 : vector<16x256xi1>, vector<16x256xf32>
    %c0_59 = arith.constant 0 : index
    %c32_60 = arith.constant 32 : index
    %99 = vector.load %arg14[%c0_59, %c32_60] : memref<16x290xf32, #tpu.memory_space<vmem>>, vector<16x256xf32>
    %cst_61 = arith.constant 0.000000e+00 : f32
    %100 = vector.shape_cast %18 : vector<1x256xi1> to vector<1x256xi1>
    %101 = vector.broadcast %100 : vector<1x256xi1> to vector<16x256xi1>
    %102 = vector.broadcast %cst_61 : f32 to vector<16x256xf32>
    %103 = arith.select %101, %99, %102 : vector<16x256xi1>, vector<16x256xf32>
    %c0_62 = arith.constant 0 : index
    %c33_63 = arith.constant 33 : index
    %104 = vector.load %arg14[%c0_62, %c33_63] : memref<16x290xf32, #tpu.memory_space<vmem>>, vector<16x256xf32>
    %c0_64 = arith.constant 0 : index
    %c34_65 = arith.constant 34 : index
    %105 = vector.load %arg14[%c0_64, %c34_65] : memref<16x290xf32, #tpu.memory_space<vmem>>, vector<16x256xf32>
    %cst_66 = arith.constant 0.000000e+00 : f32
    %106 = vector.shape_cast %20 : vector<1x256xi1> to vector<1x256xi1>
    %107 = vector.broadcast %106 : vector<1x256xi1> to vector<16x256xi1>
    %108 = vector.broadcast %cst_66 : f32 to vector<16x256xf32>
    %109 = arith.select %107, %105, %108 : vector<16x256xi1>, vector<16x256xf32>
    %110 = tpu.concatenate %81, %82, %87, %92, %93, %98, %103, %104, %109 in 0 : vector<16x256xf32>, vector<16x256xf32>, vector<16x256xf32>, vector<16x256xf32>, vector<16x256xf32>, vector<16x256xf32>, vector<16x256xf32>, vector<16x256xf32>, vector<16x256xf32> -> vector<144x256xf32>
    %cst_67 = arith.constant dense<0.000000e+00> : vector<8x256xf32>
    %111 = tpu.matmul %70, %110, %cst_67 {dimension_numbers = #tpu.dot_dimension_numbers<[1], [0], [0], [1], [0, 0, 1, 1], [], []>} : vector<8x144xf32>, vector<144x256xf32>, vector<8x256xf32> -> vector<8x256xf32>
    %112 = tpu.concatenate %68, %111 in 0 : vector<16x256xf32>, vector<8x256xf32> -> vector<24x256xf32>
    %c0_68 = arith.constant 0 : index
    %c0_69 = arith.constant 0 : index
    %113 = vector.load %arg6[%c0_68, %c0_69] : memref<8x24xf32, #tpu.memory_space<vmem>>, vector<8x24xf32>
    %cst_70 = arith.constant dense<0.000000e+00> : vector<8x256xf32>
    %114 = tpu.matmul %113, %112, %cst_70 {dimension_numbers = #tpu.dot_dimension_numbers<[1], [0], [0], [1], [0, 0, 1, 1], [], []>} : vector<8x24xf32>, vector<24x256xf32>, vector<8x256xf32> -> vector<8x256xf32>
    %115 = arith.addf %24, %114 : vector<8x256xf32>
    %c0_71 = arith.constant 0 : index
    %c0_72 = arith.constant 0 : index
    %116 = vector.load %arg7[%c0_71, %c0_72] : memref<16x8xf32, #tpu.memory_space<vmem>>, vector<16x8xf32>
    %c0_73 = arith.constant 0 : index
    %c0_74 = arith.constant 0 : index
    %117 = vector.load %arg8[%c0_73, %c0_74] : memref<8x144xf32, #tpu.memory_space<vmem>>, vector<8x144xf32>
    %cst_75 = arith.constant 0.000000e+00 : f32
    %118 = vector.broadcast %cst_75 : f32 to vector<8x256xf32>
    %119 = arith.maximumf %115, %118 : vector<8x256xf32>
    %cst_76 = arith.constant dense<0.000000e+00> : vector<16x256xf32>
    %120 = tpu.matmul %116, %119, %cst_76 {dimension_numbers = #tpu.dot_dimension_numbers<[1], [0], [0], [1], [0, 0, 1, 1], [], []>} : vector<16x8xf32>, vector<8x256xf32>, vector<16x256xf32> -> vector<16x256xf32>
    %cst_77 = arith.constant 0.000000e+00 : f32
    %121 = vector.broadcast %cst_77 : f32 to vector<16x256xf32>
    %122 = arith.maximumf %120, %121 : vector<16x256xf32>
    %c0_78 = arith.constant 0 : index
    %c17_79 = arith.constant 17 : index
    %123 = vector.load %arg14[%c0_78, %c17_79] : memref<16x290xf32, #tpu.memory_space<vmem>>, vector<16x256xf32>
    tpu.vector_store %arg14[%c0_78, %c17_79], %122 {strides = array<i32>} : memref<16x290xf32, #tpu.memory_space<vmem>>, vector<16x256xf32>,
    %c0_80 = arith.constant 0 : index
    %c0_81 = arith.constant 0 : index
    %124 = vector.load %arg14[%c0_80, %c0_81] : memref<16x290xf32, #tpu.memory_space<vmem>>, vector<16x256xf32>
    %cst_82 = arith.constant 0.000000e+00 : f32
    %125 = vector.shape_cast %18 : vector<1x256xi1> to vector<1x256xi1>
    %126 = vector.broadcast %125 : vector<1x256xi1> to vector<16x256xi1>
    %127 = vector.broadcast %cst_82 : f32 to vector<16x256xf32>
    %128 = arith.select %126, %124, %127 : vector<16x256xi1>, vector<16x256xf32>
    %c0_83 = arith.constant 0 : index
    %c1_84 = arith.constant 1 : index
    %129 = vector.load %arg14[%c0_83, %c1_84] : memref<16x290xf32, #tpu.memory_space<vmem>>, vector<16x256xf32>
    %c0_85 = arith.constant 0 : index
    %c2_86 = arith.constant 2 : index
    %130 = vector.load %arg14[%c0_85, %c2_86] : memref<16x290xf32, #tpu.memory_space<vmem>>, vector<16x256xf32>
    %cst_87 = arith.constant 0.000000e+00 : f32
    %131 = vector.shape_cast %20 : vector<1x256xi1> to vector<1x256xi1>
    %132 = vector.broadcast %131 : vector<1x256xi1> to vector<16x256xi1>
    %133 = vector.broadcast %cst_87 : f32 to vector<16x256xf32>
    %134 = arith.select %132, %130, %133 : vector<16x256xi1>, vector<16x256xf32>
    %c0_88 = arith.constant 0 : index
    %c16_89 = arith.constant 16 : index
    %135 = vector.load %arg14[%c0_88, %c16_89] : memref<16x290xf32, #tpu.memory_space<vmem>>, vector<16x256xf32>
    %cst_90 = arith.constant 0.000000e+00 : f32
    %136 = vector.shape_cast %18 : vector<1x256xi1> to vector<1x256xi1>
    %137 = vector.broadcast %136 : vector<1x256xi1> to vector<16x256xi1>
    %138 = vector.broadcast %cst_90 : f32 to vector<16x256xf32>
    %139 = arith.select %137, %135, %138 : vector<16x256xi1>, vector<16x256xf32>
    %c0_91 = arith.constant 0 : index
    %c17_92 = arith.constant 17 : index
    %140 = vector.load %arg14[%c0_91, %c17_92] : memref<16x290xf32, #tpu.memory_space<vmem>>, vector<16x256xf32>
    %c0_93 = arith.constant 0 : index
    %c18_94 = arith.constant 18 : index
    %141 = vector.load %arg14[%c0_93, %c18_94] : memref<16x290xf32, #tpu.memory_space<vmem>>, vector<16x256xf32>
    %cst_95 = arith.constant 0.000000e+00 : f32
    %142 = vector.shape_cast %20 : vector<1x256xi1> to vector<1x256xi1>
    %143 = vector.broadcast %142 : vector<1x256xi1> to vector<16x256xi1>
    %144 = vector.broadcast %cst_95 : f32 to vector<16x256xf32>
    %145 = arith.select %143, %141, %144 : vector<16x256xi1>, vector<16x256xf32>
    %c0_96 = arith.constant 0 : index
    %c32_97 = arith.constant 32 : index
    %146 = vector.load %arg14[%c0_96, %c32_97] : memref<16x290xf32, #tpu.memory_space<vmem>>, vector<16x256xf32>
    %cst_98 = arith.constant 0.000000e+00 : f32
    %147 = vector.shape_cast %18 : vector<1x256xi1> to vector<1x256xi1>
    %148 = vector.broadcast %147 : vector<1x256xi1> to vector<16x256xi1>
    %149 = vector.broadcast %cst_98 : f32 to vector<16x256xf32>
    %150 = arith.select %148, %146, %149 : vector<16x256xi1>, vector<16x256xf32>
    %c0_99 = arith.constant 0 : index
    %c33_100 = arith.constant 33 : index
    %151 = vector.load %arg14[%c0_99, %c33_100] : memref<16x290xf32, #tpu.memory_space<vmem>>, vector<16x256xf32>
    %c0_101 = arith.constant 0 : index
    %c34_102 = arith.constant 34 : index
    %152 = vector.load %arg14[%c0_101, %c34_102] : memref<16x290xf32, #tpu.memory_space<vmem>>, vector<16x256xf32>
    %cst_103 = arith.constant 0.000000e+00 : f32
    %153 = vector.shape_cast %20 : vector<1x256xi1> to vector<1x256xi1>
    %154 = vector.broadcast %153 : vector<1x256xi1> to vector<16x256xi1>
    %155 = vector.broadcast %cst_103 : f32 to vector<16x256xf32>
    %156 = arith.select %154, %152, %155 : vector<16x256xi1>, vector<16x256xf32>
    %157 = tpu.concatenate %128, %129, %134, %139, %140, %145, %150, %151, %156 in 0 : vector<16x256xf32>, vector<16x256xf32>, vector<16x256xf32>, vector<16x256xf32>, vector<16x256xf32>, vector<16x256xf32>, vector<16x256xf32>, vector<16x256xf32>, vector<16x256xf32> -> vector<144x256xf32>
    %cst_104 = arith.constant dense<0.000000e+00> : vector<8x256xf32>
    %158 = tpu.matmul %117, %157, %cst_104 {dimension_numbers = #tpu.dot_dimension_numbers<[1], [0], [0], [1], [0, 0, 1, 1], [], []>} : vector<8x144xf32>, vector<144x256xf32>, vector<8x256xf32> -> vector<8x256xf32>
    %159 = tpu.concatenate %115, %158 in 0 : vector<8x256xf32>, vector<8x256xf32> -> vector<16x256xf32>
    %c0_105 = arith.constant 0 : index
    %c0_106 = arith.constant 0 : index
    %160 = vector.load %arg9[%c0_105, %c0_106] : memref<16x16xf32, #tpu.memory_space<vmem>>, vector<16x16xf32>
    %c0_107 = arith.constant 0 : index
    %c0_108 = arith.constant 0 : index
    %161 = vector.load %arg10[%c0_107, %c0_108] : memref<8x144xf32, #tpu.memory_space<vmem>>, vector<8x144xf32>
    %cst_109 = arith.constant 0.000000e+00 : f32
    %162 = vector.broadcast %cst_109 : f32 to vector<16x256xf32>
    %163 = arith.maximumf %159, %162 : vector<16x256xf32>
    %cst_110 = arith.constant dense<0.000000e+00> : vector<16x256xf32>
    %164 = tpu.matmul %160, %163, %cst_110 {dimension_numbers = #tpu.dot_dimension_numbers<[1], [0], [0], [1], [0, 0, 1, 1], [], []>} : vector<16x16xf32>, vector<16x256xf32>, vector<16x256xf32> -> vector<16x256xf32>
    %cst_111 = arith.constant 0.000000e+00 : f32
    %165 = vector.broadcast %cst_111 : f32 to vector<16x256xf32>
    %166 = arith.maximumf %164, %165 : vector<16x256xf32>
    %c0_112 = arith.constant 0 : index
    %c17_113 = arith.constant 17 : index
    %167 = vector.load %arg14[%c0_112, %c17_113] : memref<16x290xf32, #tpu.memory_space<vmem>>, vector<16x256xf32>
    tpu.vector_store %arg14[%c0_112, %c17_113], %166 {strides = array<i32>} : memref<16x290xf32, #tpu.memory_space<vmem>>, vector<16x256xf32>,
    %c0_114 = arith.constant 0 : index
    %c0_115 = arith.constant 0 : index
    %168 = vector.load %arg14[%c0_114, %c0_115] : memref<16x290xf32, #tpu.memory_space<vmem>>, vector<16x256xf32>
    %cst_116 = arith.constant 0.000000e+00 : f32
    %169 = vector.shape_cast %18 : vector<1x256xi1> to vector<1x256xi1>
    %170 = vector.broadcast %169 : vector<1x256xi1> to vector<16x256xi1>
    %171 = vector.broadcast %cst_116 : f32 to vector<16x256xf32>
    %172 = arith.select %170, %168, %171 : vector<16x256xi1>, vector<16x256xf32>
    %c0_117 = arith.constant 0 : index
    %c1_118 = arith.constant 1 : index
    %173 = vector.load %arg14[%c0_117, %c1_118] : memref<16x290xf32, #tpu.memory_space<vmem>>, vector<16x256xf32>
    %c0_119 = arith.constant 0 : index
    %c2_120 = arith.constant 2 : index
    %174 = vector.load %arg14[%c0_119, %c2_120] : memref<16x290xf32, #tpu.memory_space<vmem>>, vector<16x256xf32>
    %cst_121 = arith.constant 0.000000e+00 : f32
    %175 = vector.shape_cast %20 : vector<1x256xi1> to vector<1x256xi1>
    %176 = vector.broadcast %175 : vector<1x256xi1> to vector<16x256xi1>
    %177 = vector.broadcast %cst_121 : f32 to vector<16x256xf32>
    %178 = arith.select %176, %174, %177 : vector<16x256xi1>, vector<16x256xf32>
    %c0_122 = arith.constant 0 : index
    %c16_123 = arith.constant 16 : index
    %179 = vector.load %arg14[%c0_122, %c16_123] : memref<16x290xf32, #tpu.memory_space<vmem>>, vector<16x256xf32>
    %cst_124 = arith.constant 0.000000e+00 : f32
    %180 = vector.shape_cast %18 : vector<1x256xi1> to vector<1x256xi1>
    %181 = vector.broadcast %180 : vector<1x256xi1> to vector<16x256xi1>
    %182 = vector.broadcast %cst_124 : f32 to vector<16x256xf32>
    %183 = arith.select %181, %179, %182 : vector<16x256xi1>, vector<16x256xf32>
    %c0_125 = arith.constant 0 : index
    %c17_126 = arith.constant 17 : index
    %184 = vector.load %arg14[%c0_125, %c17_126] : memref<16x290xf32, #tpu.memory_space<vmem>>, vector<16x256xf32>
    %c0_127 = arith.constant 0 : index
    %c18_128 = arith.constant 18 : index
    %185 = vector.load %arg14[%c0_127, %c18_128] : memref<16x290xf32, #tpu.memory_space<vmem>>, vector<16x256xf32>
    %cst_129 = arith.constant 0.000000e+00 : f32
    %186 = vector.shape_cast %20 : vector<1x256xi1> to vector<1x256xi1>
    %187 = vector.broadcast %186 : vector<1x256xi1> to vector<16x256xi1>
    %188 = vector.broadcast %cst_129 : f32 to vector<16x256xf32>
    %189 = arith.select %187, %185, %188 : vector<16x256xi1>, vector<16x256xf32>
    %c0_130 = arith.constant 0 : index
    %c32_131 = arith.constant 32 : index
    %190 = vector.load %arg14[%c0_130, %c32_131] : memref<16x290xf32, #tpu.memory_space<vmem>>, vector<16x256xf32>
    %cst_132 = arith.constant 0.000000e+00 : f32
    %191 = vector.shape_cast %18 : vector<1x256xi1> to vector<1x256xi1>
    %192 = vector.broadcast %191 : vector<1x256xi1> to vector<16x256xi1>
    %193 = vector.broadcast %cst_132 : f32 to vector<16x256xf32>
    %194 = arith.select %192, %190, %193 : vector<16x256xi1>, vector<16x256xf32>
    %c0_133 = arith.constant 0 : index
    %c33_134 = arith.constant 33 : index
    %195 = vector.load %arg14[%c0_133, %c33_134] : memref<16x290xf32, #tpu.memory_space<vmem>>, vector<16x256xf32>
    %c0_135 = arith.constant 0 : index
    %c34_136 = arith.constant 34 : index
    %196 = vector.load %arg14[%c0_135, %c34_136] : memref<16x290xf32, #tpu.memory_space<vmem>>, vector<16x256xf32>
    %cst_137 = arith.constant 0.000000e+00 : f32
    %197 = vector.shape_cast %20 : vector<1x256xi1> to vector<1x256xi1>
    %198 = vector.broadcast %197 : vector<1x256xi1> to vector<16x256xi1>
    %199 = vector.broadcast %cst_137 : f32 to vector<16x256xf32>
    %200 = arith.select %198, %196, %199 : vector<16x256xi1>, vector<16x256xf32>
    %201 = tpu.concatenate %172, %173, %178, %183, %184, %189, %194, %195, %200 in 0 : vector<16x256xf32>, vector<16x256xf32>, vector<16x256xf32>, vector<16x256xf32>, vector<16x256xf32>, vector<16x256xf32>, vector<16x256xf32>, vector<16x256xf32>, vector<16x256xf32> -> vector<144x256xf32>
    %cst_138 = arith.constant dense<0.000000e+00> : vector<8x256xf32>
    %202 = tpu.matmul %161, %201, %cst_138 {dimension_numbers = #tpu.dot_dimension_numbers<[1], [0], [0], [1], [0, 0, 1, 1], [], []>} : vector<8x144xf32>, vector<144x256xf32>, vector<8x256xf32> -> vector<8x256xf32>
    %203 = tpu.concatenate %159, %202 in 0 : vector<16x256xf32>, vector<8x256xf32> -> vector<24x256xf32>
    %c0_139 = arith.constant 0 : index
    %c0_140 = arith.constant 0 : index
    %204 = vector.load %arg11[%c0_139, %c0_140] : memref<8x24xf32, #tpu.memory_space<vmem>>, vector<8x24xf32>
    %cst_141 = arith.constant dense<0.000000e+00> : vector<8x256xf32>
    %205 = tpu.matmul %204, %203, %cst_141 {dimension_numbers = #tpu.dot_dimension_numbers<[1], [0], [0], [1], [0, 0, 1, 1], [], []>} : vector<8x24xf32>, vector<24x256xf32>, vector<8x256xf32> -> vector<8x256xf32>
    %206 = arith.addf %115, %205 : vector<8x256xf32>
    %c0_142 = arith.constant 0 : index
    %c0_143 = arith.constant 0 : index
    %207 = vector.load %arg12[%c0_142, %c0_143] : memref<8x16xf32, #tpu.memory_space<vmem>>, vector<8x16xf32>
    %208 = tpu.concatenate %115, %206 in 0 : vector<8x256xf32>, vector<8x256xf32> -> vector<16x256xf32>
    %cst_144 = arith.constant dense<0.000000e+00> : vector<8x256xf32>
    %209 = tpu.matmul %207, %208, %cst_144 {dimension_numbers = #tpu.dot_dimension_numbers<[1], [0], [0], [1], [0, 0, 1, 1], [], []>} : vector<8x16xf32>, vector<16x256xf32>, vector<8x256xf32> -> vector<8x256xf32>
    %210 = arith.addf %24, %209 : vector<8x256xf32>
    %c0_145 = arith.constant 0 : index
    %c0_146 = arith.constant 0 : index
    %c0_147 = arith.constant 0 : index
    %211 = vector.load %arg13[%c0_145, %c0_146, %c0_147] : memref<1x8x256xf32, #tpu.memory_space<vmem>>, vector<1x8x256xf32>
    %212 = vector.shape_cast %211 : vector<1x8x256xf32> to vector<8x256xf32>
    %213 = vector.shape_cast %210 : vector<8x256xf32> to vector<1x8x256xf32>
    tpu.vector_store %arg13[%c0_145, %c0_146, %c0_147], %213 {strides = array<i32>} : memref<1x8x256xf32, #tpu.memory_space<vmem>>, vector<1x8x256xf32>,
    return
  }
  func.func @transform_0(%arg0: i32) -> (i32, i32, i32) {
    %c0_i32 = arith.constant 0 : i32
    %c0_i32_0 = arith.constant 0 : i32
    %c0_i32_1 = arith.constant 0 : i32
    return %arg0, %c0_i32, %c0_i32_0 : i32, i32, i32
  }
  func.func @transform_1(%arg0: i32) -> (i32, i32) {
    %c0_i32 = arith.constant 0 : i32
    %c0_i32_0 = arith.constant 0 : i32
    %c0_i32_1 = arith.constant 0 : i32
    return %c0_i32, %c0_i32_0 : i32, i32
  }
  func.func @transform_2(%arg0: i32) -> (i32, i32) {
    %c0_i32 = arith.constant 0 : i32
    %c0_i32_0 = arith.constant 0 : i32
    %c0_i32_1 = arith.constant 0 : i32
    return %c0_i32, %c0_i32_0 : i32, i32
  }
  func.func @transform_3(%arg0: i32) -> (i32, i32) {
    %c0_i32 = arith.constant 0 : i32
    %c0_i32_0 = arith.constant 0 : i32
    %c0_i32_1 = arith.constant 0 : i32
    return %c0_i32, %c0_i32_0 : i32, i32
  }
  func.func @transform_4(%arg0: i32) -> (i32, i32) {
    %c0_i32 = arith.constant 0 : i32
    %c0_i32_0 = arith.constant 0 : i32
    %c0_i32_1 = arith.constant 0 : i32
    return %c0_i32, %c0_i32_0 : i32, i32
  }
  func.func @transform_5(%arg0: i32) -> (i32, i32) {
    %c0_i32 = arith.constant 0 : i32
    %c0_i32_0 = arith.constant 0 : i32
    %c0_i32_1 = arith.constant 0 : i32
    return %c0_i32, %c0_i32_0 : i32, i32
  }
  func.func @transform_6(%arg0: i32) -> (i32, i32) {
    %c0_i32 = arith.constant 0 : i32
    %c0_i32_0 = arith.constant 0 : i32
    %c0_i32_1 = arith.constant 0 : i32
    return %c0_i32, %c0_i32_0 : i32, i32
  }
  func.func @transform_7(%arg0: i32) -> (i32, i32) {
    %c0_i32 = arith.constant 0 : i32
    %c0_i32_0 = arith.constant 0 : i32
    %c0_i32_1 = arith.constant 0 : i32
    return %c0_i32, %c0_i32_0 : i32, i32
  }
  func.func @transform_8(%arg0: i32) -> (i32, i32) {
    %c0_i32 = arith.constant 0 : i32
    %c0_i32_0 = arith.constant 0 : i32
    %c0_i32_1 = arith.constant 0 : i32
    return %c0_i32, %c0_i32_0 : i32, i32
  }
  func.func @transform_9(%arg0: i32) -> (i32, i32) {
    %c0_i32 = arith.constant 0 : i32
    %c0_i32_0 = arith.constant 0 : i32
    %c0_i32_1 = arith.constant 0 : i32
    return %c0_i32, %c0_i32_0 : i32, i32
  }
  func.func @transform_10(%arg0: i32) -> (i32, i32) {
    %c0_i32 = arith.constant 0 : i32
    %c0_i32_0 = arith.constant 0 : i32
    %c0_i32_1 = arith.constant 0 : i32
    return %c0_i32, %c0_i32_0 : i32, i32
  }
  func.func @transform_11(%arg0: i32) -> (i32, i32) {
    %c0_i32 = arith.constant 0 : i32
    %c0_i32_0 = arith.constant 0 : i32
    %c0_i32_1 = arith.constant 0 : i32
    return %c0_i32, %c0_i32_0 : i32, i32
  }
  func.func @transform_12(%arg0: i32) -> (i32, i32, i32) {
    %c0_i32 = arith.constant 0 : i32
    %c0_i32_0 = arith.constant 0 : i32
    %c0_i32_1 = arith.constant 0 : i32
    return %arg0, %c0_i32, %c0_i32_0 : i32, i32, i32
  }
}

</mosaic_0001>

<bundles_post_ra>
// kernel: group_of_rdb_forward.1
= control target key start
LH: loop header
LB: loop body
LE: loop exit
PB: predicated region body
PF: predicated region fallthrough
CT: control target
= control target key end

     0   :  { %s3238_s21 = smov 0   ;;  %s3834_s0 = inlined_call_operand.vmem [shape: f32[2,8,256], index: 0, kind: input, shape index: {}]   ;;  %s3835_s1 = inlined_call_operand.vmem [shape: f32[16,8], index: 1, kind: input, shape index: {}]   ;;  %s3836_s2 = inlined_call_operand.vmem [shape: f32[8,144], index: 2, kind: input, shape index: {}]   ;;  %s3837_s3 = inlined_call_operand.vmem [shape: f32[16,16], index: 3, kind: input, shape index: {}]   ;;  %s3838_s4 = inlined_call_operand.vmem [shape: f32[8,144], index: 4, kind: input, shape index: {}]   ;;  %s3839_s5 = inlined_call_operand.vmem [shape: f32[8,24], index: 5, kind: input, shape index: {}]   ;;  %s3840_s6 = inlined_call_operand.vmem [shape: f32[16,8], index: 6, kind: input, shape index: {}]   ;;  %s3841_s7 = inlined_call_operand.vmem [shape: f32[8,144], index: 7, kind: input, shape index: {}]   ;;  %s3842_s8 = inlined_call_operand.vmem [shape: f32[16,16], index: 8, kind: input, shape index: {}]   ;;  %s3843_s9 = inlined_call_operand.vmem [shape: f32[8,144], index: 9, kind: input, shape index: {}]   ;;  %s3844_s10 = inlined_call_operand.vmem [shape: f32[8,24], index: 10, kind: input, shape index: {}]   ;;  %s3845_s11 = inlined_call_operand.vmem [shape: f32[8,16], index: 11, kind: input, shape index: {}]   ;;  %s3846_s12 = inlined_call_operand.vmem [shape: f32[2,8,256], index: 12, kind: output, shape index: {}]  }
   0x1 LB: > { %s2319_s22 = sadd.s32 4294967295, %s3161_s21   ;;  %p2323_p0 = scmp.ge.s32.totalorder %s3161_s21, 1  ;;  %s3161_s21 = sphi %s3238_s21, %s22_s21  }
   0x2   : > { %p362_p1 = scmp.lt.s32.totalorder %s3161_s21, 3 }
   0x4   : > { %p363_p2 = pnand %p2323_p0, %p362_p1 }
   0x5   : > { %p404_p3 = scmp.lt.s32.totalorder (!%p363_p2), %s2319_s22, 1  ;;  %v3163_v0 = vmov (!%p363_p2), 0.0   ;;  %v454_v5 = vld [vmem:[%s3835_s1] sm:$0xff] (!%p363_p2)  ;;  %vm460_vm0 = vcmask (!%p363_p2), 64512   ;;  %v455_v6 = vld [vmem:[%s3835_s1 + $0x8] sm:$0xff] (!%p363_p2)  ;;  %vm447_vm1 = vcmask (!%p363_p2), 277504   ;;  %v414_v15 = vlaneseq (!%p363_p2) }
   0x6   : > { %366 = sbr.rel (%p363_p2) target bundleno = 3584 (0xe00), region = 68  ;;  %531 = vmatprep.mubr.f32.mxu0 (!%p363_p2), %v3163_v0  ;;  %445 = vst [vmem:[#allocation2] sm:$0xff] (!%p363_p2), %v3163_v0  ;;  %449 = vst [vmem:[#allocation2 + $0x18] sm:$0xff] (!%p363_p2), %v3163_v0  ;;  %s3164_s13 = smov (!%p363_p2), 17   ;;  %vm569_vm2 = vcmask (!%p363_p2), 1047688   ;;  %vm560_vm3 = vcmask (!%p363_p2), 138240  }
   0x7   : > { %448 = vst.msk [vmem:[#allocation2 + $0x10] sm:$0xff] (!%p363_p2), %vm447_vm1, %v3163_v0  ;;  %451 = vst.msk [vmem:[#allocation2 + $0x28] sm:$0xff] (!%p363_p2), %vm447_vm1, %v3163_v0  ;;  %v3287_v16 = vand.u32 (!%p363_p2), 127, %v414_v15  ;;  %s3165_s14 = smov (!%p363_p2), 127   ;;  %s3166_s15 = smov (!%p363_p2), 126   ;;  %v457_v37 = vld [vmem:[%s3836_s2 + $0x8] sm:$0xff] (!%p363_p2) }
   0x8   : > { %s3167_s16 = smov (!%p363_p2), 112   ;;  %s3168_s17 = smov (!%p363_p2), 111   ;;  %vm788_vm8 = vcmask (!%p363_p2), 130048   ;;  %vm737_vm9 = vcmask (!%p363_p2), 1039360   ;;  %vm612_vm10 = vcmask (!%p363_p2), 1031168   ;;  %vm637_vm13 = vcmask (!%p363_p2), 916480  }
   0x9   : > { %v3290_v17 = vadd.s32 (!%p363_p2), 128, %v3287_v16  ;;  %v421_v22 = vand.u32 (!%p363_p2), 15, %v3287_v16  ;;  %s3169_s18 = smov (!%p363_p2), 110   ;;  %s3170_s19 = smov (!%p363_p2), 96   ;;  %2354 = vmatprep.mubr.msk.f32.mxu1 (!%p363_p2), %vm788_vm8, %v457_v37  ;;  %vm758_vm1 = vcmask (!%p363_p2), 908288  }
   0xa   : > { %s3171_s20 = smov (!%p363_p2), 95   ;;  %s3172_s27 = smov (!%p363_p2), 94  }
   0xb   : > { %v428_v19 = vand.u32 (!%p363_p2), 15, %v3290_v17  ;;  %vm441_vm6 = vcmp.ne.s32.totalorder (!%p363_p2), %v421_v22, 0  ;;  %vm3362_vm12 = vcmp.ne.s32.totalorder (!%p363_p2), %v421_v22, 15 }
   0xc   : > { %vm3310_vm7 = vmpackc.low (!%p363_p2), %vm441_vm6, %vm441_vm6  ;;  %vm3849_vm6 = vcmask (!%p363_p2), 785408  }
   0xd   : > { %s3880_s22 = smov (!%p404_p3, %s2319_s22), 1  ;;  %vm442_vm4 = vcmp.ne.s32.totalorder %v428_v19, 0  ;;  %vm3356_vm11 = vcmp.ne.s32.totalorder %v428_v19, 15  ;;  %vm3381_vm15 = vmpackc.low %vm3362_vm12, %vm3362_vm12  ;;  %vm3847_vm12 = vcmask 769024  }
   0xe   : > { %s2441_s23 = sshll.u32 %s3880_s22, 4  ;;  %vm3302_vm5 = vmpackc.low %vm442_vm4, %vm442_vm4  ;;  %vm662_vm4 = vcmask 900096  }
   0xf   : > { %s3257_s26 = scalar_lea.vmem %s3834_s0, %s2441_s23  ;;  %vm3374_vm14 = vmpackc.low %vm3356_vm11, %vm3356_vm11  ;;  %vm3850_vm11 = vcmask 777216   ;;  %s413_s28 = scalar_lea.vmem %s3846_s12, %s2441_s23 }
  0x10   : > { %v3260_v1 = vld [vmem:[%s3257_s26 + $0x8] sm:$0xff]  ;;  %v3263_v2 = vld [vmem:[%s3257_s26] sm:$0xff] }
  0x11   : > { %v459_v3 = vmax.f32 %v3260_v1, 0.0  ;;  %v458_v4 = vmax.f32 %v3263_v2, 0.0 }
  0x13   : > { %467 = vmatprep.subr.mxu0 %v459_v3 }
  0x14   : > { %468 = vmatpush1.msra.mxu0 %v458_v4 }
  0x15   : > { %2328 = vmatmul.mubr.msk.f32.vlgmr.msra.gmra.mrb[0].mxu0 %vm460_vm0, %v454_v5 }
  0x16   : > { %537 = vmatprep.mubr.f32.mxu0 %v3163_v0 }
  0x19   : > { %2329 = vmatmul.mubr.msk.f32.gmra.mrb[2].mxu0 %vm460_vm0, %v455_v6 }
  0x1a   : > { %939 = vmatprep.mubr.f32.mxu0 %v3163_v0 }
  0xe8   : > { %v533_v7 = vpop.f32.mrb[0].mxu0 }
  0xe9   : > { %v544_v8 = vmax.f32 %v533_v7, 0.0  ;;  %v535_v9 = vpop.f32.mrb[1].mxu0 }
  0xea   : > { %v545_v11 = vmax.f32 %v535_v9, 0.0 }
  0xeb   : > { %552 = vrot.lane.b32.xlu0 %v544_v8, %s3164_s13 }
  0xec   : > { %v539_v10 = vpop.f32.mrb[2].mxu0 }
  0xed   : > { %v546_v12 = vmax.f32 %v539_v10, 0.0  ;;  %v541_v13 = vpop.f32.mrb[3].mxu0 }
  0xee   : > { %v547_v14 = vmax.f32 %v541_v13, 0.0 }
  0xef   : > { %554 = vrot.lane.b32.xlu0 %v545_v11, %s3164_s13  ;;  %556 = vrot.lane.b32.xlu1 %v546_v12, %s3164_s13 }
  0xf3   : > { %558 = vrot.lane.b32.xlu1 %v547_v14, %s3164_s13 }
 0x15d   : > { %v553_v18 = vpop.permute.xlu0 %552 }
 0x15e   : > { %570 = vst.msk [vmem:[#allocation2] sm:$0xff] %vm569_vm2, %v553_v18 }
 0x161   : > { %v555_v20 = vpop.permute.xlu0 %554  ;;  %v557_v21 = vpop.permute.xlu1 %556 }
 0x162   : > { %572 = vst.msk [vmem:[#allocation2 + $0x10] sm:$0xff] %vm560_vm3, %v555_v20  ;;  %v561_v24 = vsel %vm560_vm3, %v553_v18, %v555_v20 }
 0x163   : > { %573 = vst.msk [vmem:[#allocation2 + $0x18] sm:$0xff] %vm569_vm2, %v557_v21 }
 0x165   : > { %v559_v23 = vpop.permute.xlu1 %558  ;;  %v576_v29 = vld [vmem:[#allocation2] sm:$0xff] }
 0x166   : > { %v562_v25 = vsel %vm560_vm3, %v557_v21, %v559_v23  ;;  %575 = vst.msk [vmem:[#allocation2 + $0x28] sm:$0xff] %vm560_vm3, %v559_v23 }
 0x167   : > { %v2443_v27 = vpack.c.bf16 %v562_v25, %v561_v24 }
 0x169   : > { %v588_v28 = vld [vmem:[#allocation2 + $0x10] sm:$0xff]  ;;  %2445 = vmatprep.subr.msk.bf16.mxu1 %vm3302_vm5, %v2443_v27 }
 0x16a   : > { %v578_v30 = vld [vmem:[#allocation2 + $0x18] sm:$0xff]  ;;  %v2673_v31 = vpack.i.bf16 %v588_v28, %v561_v24 }
 0x16b   : > { %v2446_v32 = vpack.c.bf16 %v578_v30, %v576_v29  ;;  %v2693_v34 = vpack.i.bf16 %v578_v30, %v576_v29 }
 0x16c   : > { %2674 = vrot.lane.b32.xlu0 %v2673_v31, %s3165_s14  ;;  %2679 = vrot.lane.b32.xlu1 %v2673_v31, %s3166_s15 }
 0x16d   : > { %2448 = vmatpush1.bf16.msk.msra.mxu1 %vm3310_vm7, %v2446_v32  ;;  %v589_v35 = vld [vmem:[#allocation2 + $0x28] sm:$0xff] }
 0x16e   : > { %v2708_v36 = vpack.i.bf16 %v589_v35, %v562_v25 }
 0x170   : > { %2684 = vrot.lane.b32.xlu0 %v2673_v31, %s3167_s16  ;;  %2689 = vrot.lane.b32.xlu1 %v2673_v31, %s3168_s17 }
 0x174   : > { %2694 = vrot.lane.b32.xlu0 %v2693_v34, %s3165_s14  ;;  %2699 = vrot.lane.b32.xlu1 %v2693_v34, %s3166_s15 }
 0x178   : > { %2704 = vrot.lane.b32.xlu0 %v2693_v34, %s3167_s16  ;;  %2709 = vrot.lane.b32.xlu1 %v2708_v36, %s3165_s14 }
 0x17c   : > { %2719 = vrot.lane.b32.xlu0 %v2673_v31, %s3169_s18  ;;  %2714 = vrot.lane.b32.xlu1 %v2693_v34, %s3168_s17 }
 0x180   : > { %2724 = vrot.lane.b32.xlu0 %v2708_v36, %s3166_s15  ;;  %2734 = vrot.lane.b32.xlu1 %v2708_v36, %s3167_s16 }
 0x184   : > { %2729 = vrot.lane.b32.xlu0 %v2693_v34, %s3169_s18  ;;  %2739 = vrot.lane.b32.xlu1 %v2673_v31, %s3170_s19 }
 0x188   : > { %2744 = vrot.lane.b32.xlu0 %v2708_v36, %s3168_s17  ;;  %2749 = vrot.lane.b32.xlu1 %v2708_v36, %s3169_s18 }
 0x18c   : > { %2759 = vrot.lane.b32.xlu0 %v2673_v31, %s3171_s20  ;;  %2754 = vrot.lane.b32.xlu1 %v2693_v34, %s3170_s19 }
 0x190   : > { %2764 = vrot.lane.b32.xlu0 %v2708_v36, %s3170_s19  ;;  %2774 = vrot.lane.b32.xlu1 %v2708_v36, %s3171_s20 }
 0x194   : > { %2769 = vrot.lane.b32.xlu0 %v2693_v34, %s3171_s20  ;;  %2779 = vrot.lane.b32.xlu1 %v2673_v31, %s3172_s27 }
 0x198   : > { %2784 = vrot.lane.b32.xlu0 %v2708_v36, %s3172_s27  ;;  %2789 = vrot.lane.b32.xlu1 %v2693_v34, %s3172_s27 }
 0x1de   : > { %v2675_v38 = vpop.permute.xlu0 %2674  ;;  %v2680_v39 = vpop.permute.xlu1 %2679 }
 0x1df   : > { %v2677_v44 = vunpack.i.h.bf16 %v2675_v38  ;;  %v2676_v45 = vunpack.i.l.bf16 %v2675_v38  ;;  %v2682_v60 = vunpack.i.h.bf16 %v2680_v39  ;;  %v2681_v61 = vunpack.i.l.bf16 %v2680_v39 }
 0x1e1   : > { %v739_v52 = vsel %vm737_vm9, %v2676_v45, %v2677_v44  ;;  %v614_v15 = vsel %vm612_vm10, %v2681_v61, %v2682_v60 }
 0x1e2   : > { %v2685_v40 = vpop.permute.xlu0 %2684  ;;  %v3344_v41 = vpop.permute.xlu1 %2689 }
 0x1e3   : > { %v2687_v5 = vunpack.i.h.bf16 %v2685_v40  ;;  %v2686_v6 = vunpack.i.l.bf16 %v2685_v40  ;;  %v2692_v31 = vunpack.i.h.bf16 %v3344_v41  ;;  %v2691_v32 = vunpack.i.l.bf16 %v3344_v41 }
 0x1e5   : > { %v639_v29 = vsel %vm637_vm13, %v2686_v6, %v2687_v5 }
 0x1e6   : > { %v2695_v42 = vpop.permute.xlu0 %2694  ;;  %v2700_v43 = vpop.permute.xlu1 %2699 }
 0x1e7   : > { %v2696_v46 = vunpack.i.l.bf16 %v2695_v42  ;;  %v2697_v49 = vunpack.i.h.bf16 %v2695_v42  ;;  %v2701_v62 = vunpack.i.l.bf16 %v2700_v43  ;;  %v2702_v7 = vunpack.i.h.bf16 %v2700_v43 }
 0x1e9   : > { %v738_v54 = vsel %vm737_vm9, %v2696_v46, %v2676_v45  ;;  %v613_v17 = vsel %vm612_vm10, %v2701_v62, %v2681_v61 }
 0x1ea   : > { %v2705_v47 = vpop.permute.xlu0 %2704  ;;  %v2710_v48 = vpop.permute.xlu1 %2709 }
 0x1eb   : > { %v2712_v50 = vunpack.i.h.bf16 %v2710_v48  ;;  %v2711_v51 = vunpack.i.l.bf16 %v2710_v48  ;;  %v2707_v18 = vunpack.i.h.bf16 %v2705_v47  ;;  %v2706_v19 = vunpack.i.l.bf16 %v2705_v47 }
 0x1ec   : > { %v760_v48 = vsel %vm758_vm1, %v2691_v32, %v2692_v31 }
 0x1ed   : > { %v741_v53 = vsel %vm737_vm9, %v2711_v51, %v2712_v50  ;;  %v740_v55 = vsel %vm737_vm9, %v2697_v49, %v2711_v51  ;;  %v638_v36 = vsel %vm637_vm13, %v2706_v19, %v2686_v6 }
 0x1ee   : > { %v3350_v56 = vpop.permute.xlu0 %2719  ;;  %v3352_v57 = vpop.permute.xlu1 %2714  ;;  %v2449_v58 = vpack.c.bf16 %v741_v53, %v739_v52  ;;  %v2451_v59 = vpack.c.bf16 %v740_v55, %v738_v54 }
 0x1ef   : > { %v2716_v34 = vunpack.i.l.bf16 %v3352_v57  ;;  %v2722_v37 = vunpack.i.h.bf16 %v3350_v56  ;;  %v2721_v38 = vunpack.i.l.bf16 %v3350_v56  ;;  %v2717_v39 = vunpack.i.h.bf16 %v3352_v57 }
 0x1f0   : > { %2450 = vmatprep.subr.bf16.mxu1 %v2449_v58 }
 0x1f1   : > { %2452 = vmatpush1.bf16.msra.mxu1 %v2451_v59  ;;  %v759_v49 = vsel %vm758_vm1, %v2716_v34, %v2691_v32  ;;  %v664_v58 = vsel %vm662_vm4, %v2721_v38, %v2722_v37 }
 0x1f2   : > { %v2725_v8 = vpop.permute.xlu0 %2724  ;;  %v2735_v9 = vpop.permute.xlu1 %2734 }
 0x1f3   : > { %v2727_v11 = vunpack.i.h.bf16 %v2725_v8  ;;  %v2726_v12 = vunpack.i.l.bf16 %v2725_v8  ;;  %v2737_v13 = vunpack.i.h.bf16 %v2735_v9  ;;  %v2736_v14 = vunpack.i.l.bf16 %v2735_v9 }
 0x1f5   : > { %v615_v20 = vsel %vm612_vm10, %v2702_v7, %v2726_v12  ;;  %v616_v21 = vsel %vm612_vm10, %v2726_v12, %v2727_v11  ;;  %v641_v16 = vsel %vm637_vm13, %v2736_v14, %v2737_v13  ;;  %v640_v30 = vsel %vm637_vm13, %v2707_v18, %v2736_v14 }
 0x1f6   : > { %v2453_v23 = vpack.c.bf16 %v616_v21, %v614_v15  ;;  %v2456_v24 = vpack.c.bf16 %v615_v20, %v613_v17  ;;  %v2730_v25 = vpop.permute.xlu0 %2729  ;;  %v2740_v27 = vpop.permute.xlu1 %2739  ;;  %v2459_v35 = vpack.c.bf16 %v641_v16, %v639_v29  ;;  %v2462_v40 = vpack.c.bf16 %v640_v30, %v638_v36 }
 0x1f7   : > { %v2732_v47 = vunpack.i.h.bf16 %v2730_v25  ;;  %v2731_v50 = vunpack.i.l.bf16 %v2730_v25  ;;  %v2742_v60 = vunpack.i.h.bf16 %v2740_v27  ;;  %v2741_v61 = vunpack.i.l.bf16 %v2740_v27 }
 0x1f8   : > { %2455 = vmatprep.subr.msk.bf16.mxu1 %vm3374_vm14, %v2453_v23 }
 0x1f9   : > { %2458 = vmatpush1.bf16.msk.msra.mxu1 %vm3381_vm15, %v2456_v24  ;;  %v663_v63 = vsel %vm662_vm4, %v2731_v50, %v2721_v38  ;;  %v689_v17 = vsel %vm3849_vm6, %v2741_v61, %v2742_v60  ;;  %v456_v50 = vld [vmem:[%s3836_s2] sm:$0xff]  ;;  %v864_v60 = vld [vmem:[%s3837_s3 + $0x8] sm:$0xff] }
 0x1fa   : > { %v2745_v41 = vpop.permute.xlu0 %2744  ;;  %v2750_v42 = vpop.permute.xlu1 %2749  ;;  %2461 = vmatprep.subr.msk.bf16.mxu1 %vm3302_vm5, %v2459_v35 }
 0x1fb   : > { %v2747_v43 = vunpack.i.h.bf16 %v2745_v41  ;;  %v2746_v44 = vunpack.i.l.bf16 %v2745_v41  ;;  %v2752_v45 = vunpack.i.h.bf16 %v2750_v42  ;;  %v2751_v46 = vunpack.i.l.bf16 %v2750_v42 }
 0x1fd   : > { %v666_v51 = vsel %vm662_vm4, %v2751_v46, %v2752_v45  ;;  %2464 = vmatpush1.bf16.msk.msra.mxu1 %vm3310_vm7, %v2462_v40  ;;  %v762_v52 = vsel %vm758_vm1, %v2746_v44, %v2747_v43  ;;  %v761_v53 = vsel %vm758_vm1, %v2717_v39, %v2746_v44  ;;  %v665_v59 = vsel %vm662_vm4, %v2732_v47, %v2751_v46 }
 0x1fe   : > { %v2760_v54 = vpop.permute.xlu0 %2759  ;;  %v2755_v55 = vpop.permute.xlu1 %2754  ;;  %v2465_v56 = vpack.c.bf16 %v762_v52, %v760_v48  ;;  %v2467_v57 = vpack.c.bf16 %v761_v53, %v759_v49  ;;  %v2469_v62 = vpack.c.bf16 %v666_v51, %v664_v58  ;;  %v2472_v6 = vpack.c.bf16 %v665_v59, %v663_v63  ;;  %v863_v59 = vld [vmem:[%s3837_s3] sm:$0xff] }
 0x1ff   : > { %v2756_v5 = vunpack.i.l.bf16 %v2755_v55  ;;  %v2762_v7 = vunpack.i.h.bf16 %v2760_v54  ;;  %v2761_v8 = vunpack.i.l.bf16 %v2760_v54  ;;  %v2757_v9 = vunpack.i.h.bf16 %v2755_v55 }
 0x200   : > { %2466 = vmatprep.subr.bf16.mxu1 %v2465_v56 }
 0x201   : > { %2468 = vmatpush1.bf16.msra.mxu1 %v2467_v57  ;;  %v688_v18 = vsel %vm3849_vm6, %v2756_v5, %v2741_v61  ;;  %v781_v30 = vsel %vm3850_vm11, %v2761_v8, %v2762_v7 }
 0x202   : > { %v2765_v10 = vpop.permute.xlu0 %2764  ;;  %v2775_v11 = vpop.permute.xlu1 %2774  ;;  %2471 = vmatprep.subr.msk.bf16.mxu1 %vm3374_vm14, %v2469_v62 }
 0x203   : > { %v2767_v12 = vunpack.i.h.bf16 %v2765_v10  ;;  %v2766_v13 = vunpack.i.l.bf16 %v2765_v10  ;;  %v2777_v14 = vunpack.i.h.bf16 %v2775_v11  ;;  %v2776_v15 = vunpack.i.l.bf16 %v2775_v11 }
 0x205   : > { %v690_v19 = vsel %vm3849_vm6, %v2757_v9, %v2766_v13  ;;  %v691_v20 = vsel %vm3849_vm6, %v2766_v13, %v2767_v12  ;;  %2474 = vmatpush1.bf16.msk.msra.mxu1 %vm3381_vm15, %v2472_v6  ;;  %v783_v21 = vsel %vm3850_vm11, %v2776_v15, %v2777_v14 }
 0x206   : > { %v2475_v16 = vpack.c.bf16 %v691_v20, %v689_v17  ;;  %v2478_v23 = vpack.c.bf16 %v690_v19, %v688_v18  ;;  %v2770_v24 = vpop.permute.xlu0 %2769  ;;  %v2780_v25 = vpop.permute.xlu1 %2779  ;;  %v2481_v31 = vpack.c.bf16 %v783_v21, %v781_v30 }
 0x207   : > { %v2772_v27 = vunpack.i.h.bf16 %v2770_v24  ;;  %v2771_v29 = vunpack.i.l.bf16 %v2770_v24  ;;  %v2782_v32 = vunpack.i.h.bf16 %v2780_v25  ;;  %v2781_v34 = vunpack.i.l.bf16 %v2780_v25  ;;  %v866_v24 = vld [vmem:[%s3838_s4 + $0x8] sm:$0xff] }
 0x208   : > { %2477 = vmatprep.subr.msk.bf16.mxu1 %vm3302_vm5, %v2475_v16 }
 0x209   : > { %2480 = vmatpush1.bf16.msk.msra.mxu1 %vm3310_vm7, %v2478_v23  ;;  %v780_v35 = vsel %vm3850_vm11, %v2771_v29, %v2761_v8  ;;  %v782_v36 = vsel %vm3850_vm11, %v2772_v27, %v2776_v15  ;;  %v714_v44 = vsel %vm3847_vm12, %v2781_v34, %v2782_v32 }
 0x20a   : > { %v2785_v37 = vpop.permute.xlu0 %2784  ;;  %v2790_v38 = vpop.permute.xlu1 %2789  ;;  %2482 = vmatprep.subr.bf16.mxu1 %v2481_v31  ;;  %v2483_v39 = vpack.c.bf16 %v782_v36, %v780_v35 }
 0x20b   : > { %v2787_v40 = vunpack.i.h.bf16 %v2785_v37  ;;  %v2786_v41 = vunpack.i.l.bf16 %v2785_v37  ;;  %v2792_v42 = vunpack.i.h.bf16 %v2790_v38  ;;  %v2791_v43 = vunpack.i.l.bf16 %v2790_v38 }
 0x20d   : > { %v716_v45 = vsel %vm3847_vm12, %v2786_v41, %v2787_v40  ;;  %v715_v46 = vsel %vm3847_vm12, %v2792_v42, %v2786_v41  ;;  %v713_v47 = vsel %vm3847_vm12, %v2791_v43, %v2781_v34  ;;  %2484 = vmatpush1.bf16.msra.mxu1 %v2483_v39 }
 0x20e   : > { %v2485_v48 = vpack.c.bf16 %v716_v45, %v714_v44  ;;  %v2488_v49 = vpack.c.bf16 %v715_v46, %v713_v47 }
 0x210   : > { %2487 = vmatprep.subr.msk.bf16.mxu1 %vm3374_vm14, %v2485_v48 }
 0x211   : > { %2490 = vmatpush1.bf16.msk.msra.mxu1 %vm3381_vm15, %v2488_v49 }
 0x214   : > { %857 = vmatmul.mubr.f32.vlgmr.msra.gmra.mrb[0].mxu1 %v456_v50 }
 0x215   : > { %1321 = vmatprep.mubr.f32.mxu1 %v3163_v0 }
 0x2e7   : > { %v858_v51 = vpop.f32.mrb[0].mxu1 }
 0x2e8   : > { %v867_v52 = vmax.f32 %v858_v51, 0.0  ;;  %v860_v53 = vpop.f32.mrb[1].mxu1  ;;  %v2545_v56 = vpack.c.bf16 %v858_v51, %v3263_v2 }
 0x2e9   : > { %v868_v54 = vmax.f32 %v860_v53, 0.0  ;;  %v2543_v55 = vpack.c.bf16 %v860_v53, %v3260_v1 }
 0x2ea   : > { %v2493_v58 = vpack.c.bf16 %v867_v52, %v458_v4 }
 0x2eb   : > { %v2491_v57 = vpack.c.bf16 %v868_v54, %v459_v3  ;;  %2544 = vmatprep.subr.bf16.mxu1 %v2543_v55 }
 0x2ec   : > { %2546 = vmatpush1.bf16.msra.mxu1 %v2545_v56 }
 0x2ed   : > { %2492 = vmatprep.subr.bf16.mxu0 %v2491_v57 }
 0x2ee   : > { %2494 = vmatpush1.bf16.msra.mxu0 %v2493_v58 }
 0x2f1   : > { %2355 = vmatmul.mubr.msk.f32.vlgmr.msra.gmra.mrb[4].mxu0 %vm788_vm8, %v863_v59 }
 0x2f2   : > { %945 = vmatprep.mubr.f32.mxu0 %v3163_v0 }
 0x2f5   : > { %2356 = vmatmul.mubr.msk.f32.gmra.mrb[6].mxu0 %vm788_vm8, %v864_v60 }
 0x2f6   : > { %2381 = vmatprep.mubr.msk.f32.mxu0 %vm788_vm8, %v866_v24 }
 0x3c4   : > { %v941_v3 = vpop.f32.mrb[4].mxu0 }
 0x3c5   : > { %v952_v61 = vmax.f32 %v941_v3, 0.0  ;;  %v943_v4 = vpop.f32.mrb[5].mxu0 }
 0x3c6   : > { %v953_v62 = vmax.f32 %v943_v4, 0.0 }
 0x3c7   : > { %960 = vrot.lane.b32.xlu0 %v952_v61, %s3164_s13 }
 0x3c8   : > { %962 = vrot.lane.b32.xlu1 %v953_v62, %s3164_s13  ;;  %v947_v63 = vpop.f32.mrb[6].mxu0 }
 0x3c9   : > { %v954_v5 = vmax.f32 %v947_v63, 0.0  ;;  %v949_v6 = vpop.f32.mrb[7].mxu0 }
 0x3ca   : > { %v955_v7 = vmax.f32 %v949_v6, 0.0 }
 0x3cb   : > { %964 = vrot.lane.b32.xlu0 %v954_v5, %s3164_s13 }
 0x3cc   : > { %966 = vrot.lane.b32.xlu1 %v955_v7, %s3164_s13 }
 0x439   : > { %v961_v8 = vpop.permute.xlu0 %960 }
 0x43a   : > { %976 = vst.msk [vmem:[#allocation2] sm:$0xff] %vm569_vm2, %v961_v8  ;;  %v963_v9 = vpop.permute.xlu1 %962 }
 0x43b   : > { %978 = vst.msk [vmem:[#allocation2 + $0x10] sm:$0xff] %vm560_vm3, %v963_v9  ;;  %v968_v12 = vsel %vm560_vm3, %v961_v8, %v963_v9 }
 0x43d   : > { %v965_v10 = vpop.permute.xlu0 %964 }
 0x43e   : > { %979 = vst.msk [vmem:[#allocation2 + $0x18] sm:$0xff] %vm569_vm2, %v965_v10  ;;  %v967_v11 = vpop.permute.xlu1 %966 }
 0x43f   : > { %v969_v13 = vsel %vm560_vm3, %v965_v10, %v967_v11  ;;  %981 = vst.msk [vmem:[#allocation2 + $0x28] sm:$0xff] %vm560_vm3, %v967_v11 }
 0x440   : > { %v2495_v14 = vpack.c.bf16 %v969_v13, %v968_v12 }
 0x441   : > { %v982_v18 = vld [vmem:[#allocation2] sm:$0xff] }
 0x442   : > { %v990_v15 = vld [vmem:[#allocation2 + $0x10] sm:$0xff]  ;;  %2497 = vmatprep.subr.msk.bf16.mxu0 %vm3302_vm5, %v2495_v14 }
 0x443   : > { %v2793_v17 = vpack.i.bf16 %v990_v15, %v968_v12 }
 0x445   : > { %v984_v19 = vld [vmem:[#allocation2 + $0x18] sm:$0xff]  ;;  %2794 = vrot.lane.b32.xlu0 %v2793_v17, %s3165_s14  ;;  %2799 = vrot.lane.b32.xlu1 %v2793_v17, %s3166_s15 }
 0x446   : > { %v2498_v20 = vpack.c.bf16 %v984_v19, %v982_v18  ;;  %v2813_v21 = vpack.i.bf16 %v984_v19, %v982_v18  ;;  %v991_v16 = vld [vmem:[#allocation2 + $0x28] sm:$0xff] }
 0x447   : > { %v2828_v23 = vpack.i.bf16 %v991_v16, %v969_v13 }
 0x448   : > { %2500 = vmatpush1.bf16.msk.msra.mxu0 %vm3310_vm7, %v2498_v20 }
 0x449   : > { %2804 = vrot.lane.b32.xlu0 %v2793_v17, %s3167_s16  ;;  %2809 = vrot.lane.b32.xlu1 %v2793_v17, %s3168_s17 }
 0x44d   : > { %2814 = vrot.lane.b32.xlu0 %v2813_v21, %s3165_s14  ;;  %2819 = vrot.lane.b32.xlu1 %v2813_v21, %s3166_s15 }
 0x451   : > { %2824 = vrot.lane.b32.xlu0 %v2813_v21, %s3167_s16  ;;  %2829 = vrot.lane.b32.xlu1 %v2828_v23, %s3165_s14 }
 0x455   : > { %2839 = vrot.lane.b32.xlu0 %v2793_v17, %s3169_s18  ;;  %2834 = vrot.lane.b32.xlu1 %v2813_v21, %s3168_s17 }
 0x459   : > { %2844 = vrot.lane.b32.xlu0 %v2828_v23, %s3166_s15  ;;  %2854 = vrot.lane.b32.xlu1 %v2828_v23, %s3167_s16 }
 0x45d   : > { %2849 = vrot.lane.b32.xlu0 %v2813_v21, %s3169_s18  ;;  %2859 = vrot.lane.b32.xlu1 %v2793_v17, %s3170_s19 }
 0x461   : > { %2864 = vrot.lane.b32.xlu0 %v2828_v23, %s3168_s17  ;;  %2869 = vrot.lane.b32.xlu1 %v2828_v23, %s3169_s18 }
 0x465   : > { %2879 = vrot.lane.b32.xlu0 %v2793_v17, %s3171_s20  ;;  %2874 = vrot.lane.b32.xlu1 %v2813_v21, %s3170_s19 }
 0x469   : > { %2884 = vrot.lane.b32.xlu0 %v2828_v23, %s3170_s19  ;;  %2894 = vrot.lane.b32.xlu1 %v2828_v23, %s3171_s20 }
 0x46d   : > { %2889 = vrot.lane.b32.xlu0 %v2813_v21, %s3171_s20  ;;  %2899 = vrot.lane.b32.xlu1 %v2793_v17, %s3172_s27 }
 0x471   : > { %2904 = vrot.lane.b32.xlu0 %v2828_v23, %s3172_s27  ;;  %2909 = vrot.lane.b32.xlu1 %v2813_v21, %s3172_s27 }
 0x4b7   : > { %v2795_v25 = vpop.permute.xlu0 %2794  ;;  %v2800_v27 = vpop.permute.xlu1 %2799 }
 0x4b8   : > { %v2797_v34 = vunpack.i.h.bf16 %v2795_v25  ;;  %v2796_v35 = vunpack.i.l.bf16 %v2795_v25  ;;  %v2802_v50 = vunpack.i.h.bf16 %v2800_v27  ;;  %v2801_v51 = vunpack.i.l.bf16 %v2800_v27 }
 0x4ba   : > { %v1131_v44 = vsel %vm737_vm9, %v2796_v35, %v2797_v34  ;;  %v1011_v61 = vsel %vm612_vm10, %v2801_v51, %v2802_v50 }
 0x4bb   : > { %v2805_v29 = vpop.permute.xlu0 %2804  ;;  %v3495_v30 = vpop.permute.xlu1 %2809 }
 0x4bc   : > { %v2807_v53 = vunpack.i.h.bf16 %v2805_v29  ;;  %v2806_v54 = vunpack.i.l.bf16 %v2805_v29  ;;  %v2812_v14 = vunpack.i.h.bf16 %v3495_v30  ;;  %v2811_v15 = vunpack.i.l.bf16 %v3495_v30 }
 0x4be   : > { %v1035_v12 = vsel %vm637_vm13, %v2806_v54, %v2807_v53 }
 0x4bf   : > { %v2815_v31 = vpop.permute.xlu0 %2814  ;;  %v2820_v32 = vpop.permute.xlu1 %2819 }
 0x4c0   : > { %v2816_v36 = vunpack.i.l.bf16 %v2815_v31  ;;  %v2817_v39 = vunpack.i.h.bf16 %v2815_v31  ;;  %v2821_v52 = vunpack.i.l.bf16 %v2820_v32  ;;  %v2822_v55 = vunpack.i.h.bf16 %v2820_v32 }
 0x4c2   : > { %v1130_v42 = vsel %vm737_vm9, %v2816_v36, %v2796_v35  ;;  %v1010_v4 = vsel %vm612_vm10, %v2821_v52, %v2801_v51  ;;  %v1151_v35 = vsel %vm758_vm1, %v2811_v15, %v2812_v14 }
 0x4c3   : > { %v2825_v37 = vpop.permute.xlu0 %2824  ;;  %v2830_v38 = vpop.permute.xlu1 %2829 }
 0x4c4   : > { %v2832_v40 = vunpack.i.h.bf16 %v2830_v38  ;;  %v2831_v41 = vunpack.i.l.bf16 %v2830_v38  ;;  %v2827_v62 = vunpack.i.h.bf16 %v2825_v37  ;;  %v2826_v63 = vunpack.i.l.bf16 %v2825_v37 }
 0x4c6   : > { %v1132_v43 = vsel %vm737_vm9, %v2817_v39, %v2831_v41  ;;  %v1133_v45 = vsel %vm737_vm9, %v2831_v41, %v2832_v40  ;;  %v1034_v19 = vsel %vm637_vm13, %v2826_v63, %v2806_v54 }
 0x4c7   : > { %v2503_v46 = vpack.c.bf16 %v1132_v43, %v1130_v42  ;;  %v3501_v47 = vpop.permute.xlu0 %2839  ;;  %v2835_v48 = vpop.permute.xlu1 %2834  ;;  %v2501_v49 = vpack.c.bf16 %v1133_v45, %v1131_v44 }
 0x4c8   : > { %v2836_v17 = vunpack.i.l.bf16 %v2835_v48  ;;  %v2842_v20 = vunpack.i.h.bf16 %v3501_v47  ;;  %v2841_v21 = vunpack.i.l.bf16 %v3501_v47  ;;  %v2837_v16 = vunpack.i.h.bf16 %v2835_v48 }
 0x4c9   : > { %2502 = vmatprep.subr.bf16.mxu0 %v2501_v49 }
 0x4ca   : > { %2504 = vmatpush1.bf16.msra.mxu0 %v2503_v46  ;;  %v1150_v32 = vsel %vm758_vm1, %v2836_v17, %v2811_v15  ;;  %v1059_v44 = vsel %vm662_vm4, %v2841_v21, %v2842_v20 }
 0x4cb   : > { %v2845_v56 = vpop.permute.xlu0 %2844  ;;  %v2855_v57 = vpop.permute.xlu1 %2854 }
 0x4cc   : > { %v2847_v58 = vunpack.i.h.bf16 %v2845_v56  ;;  %v2846_v59 = vunpack.i.l.bf16 %v2845_v56  ;;  %v2857_v60 = vunpack.i.h.bf16 %v2855_v57  ;;  %v2856_v3 = vunpack.i.l.bf16 %v2855_v57 }
 0x4ce   : > { %v1012_v5 = vsel %vm612_vm10, %v2822_v55, %v2846_v59  ;;  %v1013_v6 = vsel %vm612_vm10, %v2846_v59, %v2847_v58  ;;  %v1037_v7 = vsel %vm637_vm13, %v2856_v3, %v2857_v60  ;;  %v1036_v13 = vsel %vm637_vm13, %v2827_v62, %v2856_v3 }
 0x4cf   : > { %v2505_v8 = vpack.c.bf16 %v1013_v6, %v1011_v61  ;;  %v2508_v9 = vpack.c.bf16 %v1012_v5, %v1010_v4  ;;  %v2850_v10 = vpop.permute.xlu0 %2849  ;;  %v2860_v11 = vpop.permute.xlu1 %2859  ;;  %v2511_v18 = vpack.c.bf16 %v1037_v7, %v1035_v12  ;;  %v2514_v23 = vpack.c.bf16 %v1036_v13, %v1034_v19 }
 0x4d0   : > { %v2852_v34 = vunpack.i.h.bf16 %v2850_v10  ;;  %v2851_v36 = vunpack.i.l.bf16 %v2850_v10  ;;  %v2862_v46 = vunpack.i.h.bf16 %v2860_v11  ;;  %v2861_v47 = vunpack.i.l.bf16 %v2860_v11 }
 0x4d1   : > { %2507 = vmatprep.subr.msk.bf16.mxu0 %vm3374_vm14, %v2505_v8 }
 0x4d2   : > { %2510 = vmatpush1.bf16.msk.msra.mxu0 %vm3381_vm15, %v2508_v9  ;;  %v1058_v49 = vsel %vm662_vm4, %v2851_v36, %v2841_v21  ;;  %v1083_v3 = vsel %vm3849_vm6, %v2861_v47, %v2862_v46 }
 0x4d3   : > { %v2865_v24 = vpop.permute.xlu0 %2864  ;;  %v2870_v25 = vpop.permute.xlu1 %2869  ;;  %2513 = vmatprep.subr.msk.bf16.mxu0 %vm3302_vm5, %v2511_v18 }
 0x4d4   : > { %v2867_v27 = vunpack.i.h.bf16 %v2865_v24  ;;  %v2866_v29 = vunpack.i.l.bf16 %v2865_v24  ;;  %v2872_v30 = vunpack.i.h.bf16 %v2870_v25  ;;  %v2871_v31 = vunpack.i.l.bf16 %v2870_v25 }
 0x4d6   : > { %v1152_v37 = vsel %vm758_vm1, %v2837_v16, %v2866_v29  ;;  %v1061_v38 = vsel %vm662_vm4, %v2871_v31, %v2872_v30  ;;  %2516 = vmatpush1.bf16.msk.msra.mxu0 %vm3310_vm7, %v2514_v23  ;;  %v1153_v39 = vsel %vm758_vm1, %v2866_v29, %v2867_v27  ;;  %v1060_v45 = vsel %vm662_vm4, %v2852_v34, %v2871_v31  ;;  %v865_v34 = vld [vmem:[%s3838_s4] sm:$0xff] }
 0x4d7   : > { %v2519_v40 = vpack.c.bf16 %v1152_v37, %v1150_v32  ;;  %v2880_v41 = vpop.permute.xlu0 %2879  ;;  %v2875_v42 = vpop.permute.xlu1 %2874  ;;  %v2517_v43 = vpack.c.bf16 %v1153_v39, %v1151_v35  ;;  %v2521_v48 = vpack.c.bf16 %v1061_v38, %v1059_v44  ;;  %v2524_v51 = vpack.c.bf16 %v1060_v45, %v1058_v49  ;;  %v1252_v37 = vld [vmem:[%s3839_s5] sm:$0xff] }
 0x4d8   : > { %v2876_v50 = vunpack.i.l.bf16 %v2875_v42  ;;  %v2882_v52 = vunpack.i.h.bf16 %v2880_v41  ;;  %v2881_v53 = vunpack.i.l.bf16 %v2880_v41  ;;  %v2877_v54 = vunpack.i.h.bf16 %v2875_v42  ;;  %v1330_v44 = vld [vmem:[%s3840_s6] sm:$0xff] }
 0x4d9   : > { %2518 = vmatprep.subr.bf16.mxu0 %v2517_v43 }
 0x4da   : > { %2520 = vmatpush1.bf16.msra.mxu0 %v2519_v40  ;;  %v1082_v61 = vsel %vm3849_vm6, %v2876_v50, %v2861_v47  ;;  %v1171_v11 = vsel %vm3850_vm11, %v2881_v53, %v2882_v52 }
 0x4db   : > { %v2885_v55 = vpop.permute.xlu0 %2884  ;;  %v2895_v56 = vpop.permute.xlu1 %2894  ;;  %2523 = vmatprep.subr.msk.bf16.mxu0 %vm3374_vm14, %v2521_v48 }
 0x4dc   : > { %v2887_v57 = vunpack.i.h.bf16 %v2885_v55  ;;  %v2886_v58 = vunpack.i.l.bf16 %v2885_v55  ;;  %v2897_v59 = vunpack.i.h.bf16 %v2895_v56  ;;  %v2896_v60 = vunpack.i.l.bf16 %v2895_v56 }
 0x4de   : > { %v1084_v4 = vsel %vm3849_vm6, %v2877_v54, %v2886_v58  ;;  %v1085_v62 = vsel %vm3849_vm6, %v2886_v58, %v2887_v57  ;;  %2526 = vmatpush1.bf16.msk.msra.mxu0 %vm3381_vm15, %v2524_v51  ;;  %v1173_v63 = vsel %vm3850_vm11, %v2896_v60, %v2897_v59 }
 0x4df   : > { %v2527_v5 = vpack.c.bf16 %v1085_v62, %v1083_v3  ;;  %v2530_v6 = vpack.c.bf16 %v1084_v4, %v1082_v61  ;;  %v2890_v7 = vpop.permute.xlu0 %2889  ;;  %v2900_v8 = vpop.permute.xlu1 %2899  ;;  %v2533_v12 = vpack.c.bf16 %v1173_v63, %v1171_v11 }
 0x4e0   : > { %v2892_v9 = vunpack.i.h.bf16 %v2890_v7  ;;  %v2891_v10 = vunpack.i.l.bf16 %v2890_v7  ;;  %v2902_v15 = vunpack.i.h.bf16 %v2900_v8  ;;  %v2901_v17 = vunpack.i.l.bf16 %v2900_v8 }
 0x4e1   : > { %2529 = vmatprep.subr.msk.bf16.mxu0 %vm3302_vm5, %v2527_v5 }
 0x4e2   : > { %v1170_v13 = vsel %vm3850_vm11, %v2891_v10, %v2881_v53  ;;  %v1172_v14 = vsel %vm3850_vm11, %v2892_v9, %v2896_v60  ;;  %2532 = vmatpush1.bf16.msk.msra.mxu0 %vm3310_vm7, %v2530_v6  ;;  %v1107_v25 = vsel %vm3847_vm12, %v2901_v17, %v2902_v15  ;;  %v1333_v6 = vld [vmem:[%s3841_s7 + $0x8] sm:$0xff] }
 0x4e3   : > { %v2535_v18 = vpack.c.bf16 %v1172_v14, %v1170_v13  ;;  %v2905_v19 = vpop.permute.xlu0 %2904  ;;  %v2910_v20 = vpop.permute.xlu1 %2909  ;;  %2534 = vmatprep.subr.bf16.mxu0 %v2533_v12 }
 0x4e4   : > { %v2907_v21 = vunpack.i.h.bf16 %v2905_v19  ;;  %v2906_v16 = vunpack.i.l.bf16 %v2905_v19  ;;  %v2912_v23 = vunpack.i.h.bf16 %v2910_v20  ;;  %v2911_v24 = vunpack.i.l.bf16 %v2910_v20 }
 0x4e6   : > { %v1109_v27 = vsel %vm3847_vm12, %v2906_v16, %v2907_v21  ;;  %v1108_v29 = vsel %vm3847_vm12, %v2912_v23, %v2906_v16  ;;  %v1106_v30 = vsel %vm3847_vm12, %v2911_v24, %v2901_v17  ;;  %2536 = vmatpush1.bf16.msra.mxu0 %v2535_v18  ;;  %vm3848_vm12 = vcmask 195584  }
 0x4e7   : > { %v2537_v31 = vpack.c.bf16 %v1109_v27, %v1107_v25  ;;  %v2540_v32 = vpack.c.bf16 %v1108_v29, %v1106_v30 }
 0x4e9   : > { %2539 = vmatprep.subr.msk.bf16.mxu0 %vm3374_vm14, %v2537_v31 }
 0x4ea   : > { %2542 = vmatpush1.bf16.msk.msra.mxu0 %vm3381_vm15, %v2540_v32 }
 0x4ed   : > { %1246 = vmatmul.mubr.f32.vlgmr.msra.gmra.mrb[8].mxu0 %v865_v34 }
 0x4ee   : > { %2409 = vmatprep.mubr.msk.f32.mxu0 %vm788_vm8, %v1333_v6 }
 0x5c0   : > { %v1247_v35 = vpop.f32.mrb[8].mxu0 }
 0x5c1   : > { %v1249_v36 = vpop.f32.mrb[9].mxu0 }
 0x5c2   : > { %1261 = vmatprep.subr.mxu1 %v1249_v36 }
 0x5c3   : > { %1262 = vmatpush1.msra.mxu1 %v1247_v35 }
 0x5c4   : > { %2382 = vmatmul.mubr.msk.f32.vlgmr.msra.gmra.mrb[2].mxu1 %vm3848_vm12, %v1252_v37 }
 0x5c5   : > { %1406 = vmatprep.mubr.f32.mxu1 %v3163_v0 }
 0x697   : > { %v1323_v38 = vpop.f32.mrb[2].mxu1 }
 0x698   : > { %v3564_v39 = vadd.f32 %v1323_v38, %v3263_v2  ;;  %v1325_v40 = vpop.f32.mrb[3].mxu1 }
 0x699   : > { %v3567_v41 = vadd.f32 %v1325_v40, %v3260_v1  ;;  %v1331_v1 = vld [vmem:[%s3840_s6 + $0x8] sm:$0xff] }
 0x69a   : > { %v1334_v43 = vmax.f32 %v3564_v39, 0.0 }
 0x69b   : > { %v1335_v42 = vmax.f32 %v3567_v41, 0.0 }
 0x69d   : > { %1342 = vmatprep.subr.mxu1 %v1335_v42 }
 0x69e   : > { %1343 = vmatpush1.msra.mxu1 %v1334_v43 }
 0x69f   : > { %2383 = vmatmul.mubr.msk.f32.vlgmr.msra.gmra.mrb[4].mxu1 %vm460_vm0, %v1330_v44 }
 0x6a0   : > { %1412 = vmatprep.mubr.f32.mxu1 %v3163_v0 }
 0x6a3   : > { %2384 = vmatmul.mubr.msk.f32.gmra.mrb[6].mxu1 %vm460_vm0, %v1331_v1  ;;  %vm3863_vm0 = vcmask 769024  }
 0x6a4   : > { %1795 = vmatprep.mubr.f32.mxu1 %v3163_v0  ;;  %vm3864_vm12 = vmmov %vm3863_vm0 }
 0x772   : > { %v1408_v2 = vpop.f32.mrb[4].mxu1 }
 0x773   : > { %v1419_v45 = vmax.f32 %v1408_v2, 0.0  ;;  %v1410_v46 = vpop.f32.mrb[5].mxu1 }
 0x774   : > { %v1420_v47 = vmax.f32 %v1410_v46, 0.0 }
 0x775   : > { %1427 = vrot.lane.b32.xlu0 %v1419_v45, %s3164_s13 }
 0x776   : > { %1429 = vrot.lane.b32.xlu1 %v1420_v47, %s3164_s13  ;;  %v1414_v48 = vpop.f32.mrb[6].mxu1 }
 0x777   : > { %v1421_v49 = vmax.f32 %v1414_v48, 0.0  ;;  %v1416_v50 = vpop.f32.mrb[7].mxu1 }
 0x778   : > { %v1422_v51 = vmax.f32 %v1416_v50, 0.0 }
 0x779   : > { %1431 = vrot.lane.b32.xlu0 %v1421_v49, %s3164_s13 }
 0x77a   : > { %1433 = vrot.lane.b32.xlu1 %v1422_v51, %s3164_s13 }
 0x7e7   : > { %v1428_v52 = vpop.permute.xlu0 %1427 }
 0x7e8   : > { %1443 = vst.msk [vmem:[#allocation2] sm:$0xff] %vm569_vm2, %v1428_v52  ;;  %v1430_v53 = vpop.permute.xlu1 %1429 }
 0x7e9   : > { %1445 = vst.msk [vmem:[#allocation2 + $0x10] sm:$0xff] %vm560_vm3, %v1430_v53  ;;  %v1435_v56 = vsel %vm560_vm3, %v1428_v52, %v1430_v53 }
 0x7eb   : > { %v1432_v54 = vpop.permute.xlu0 %1431 }
 0x7ec   : > { %1446 = vst.msk [vmem:[#allocation2 + $0x18] sm:$0xff] %vm569_vm2, %v1432_v54  ;;  %v1434_v55 = vpop.permute.xlu1 %1433 }
 0x7ed   : > { %v1436_v57 = vsel %vm560_vm3, %v1432_v54, %v1434_v55  ;;  %1448 = vst.msk [vmem:[#allocation2 + $0x28] sm:$0xff] %vm560_vm3, %v1434_v55 }
 0x7ee   : > { %v2547_v58 = vpack.c.bf16 %v1436_v57, %v1435_v56 }
 0x7ef   : > { %v1449_v3 = vld [vmem:[#allocation2] sm:$0xff] }
 0x7f0   : > { %v1457_v59 = vld [vmem:[#allocation2 + $0x10] sm:$0xff]  ;;  %2549 = vmatprep.subr.msk.bf16.mxu0 %vm3302_vm5, %v2547_v58 }
 0x7f1   : > { %v2913_v60 = vpack.i.bf16 %v1457_v59, %v1435_v56 }
 0x7f3   : > { %v1451_v61 = vld [vmem:[#allocation2 + $0x18] sm:$0xff]  ;;  %2914 = vrot.lane.b32.xlu0 %v2913_v60, %s3165_s14  ;;  %2919 = vrot.lane.b32.xlu1 %v2913_v60, %s3166_s15 }
 0x7f4   : > { %v2550_v4 = vpack.c.bf16 %v1451_v61, %v1449_v3  ;;  %v2933_v62 = vpack.i.bf16 %v1451_v61, %v1449_v3  ;;  %v1458_v63 = vld [vmem:[#allocation2 + $0x28] sm:$0xff] }
 0x7f5   : > { %v2948_v5 = vpack.i.bf16 %v1458_v63, %v1436_v57 }
 0x7f6   : > { %2552 = vmatpush1.bf16.msk.msra.mxu0 %vm3310_vm7, %v2550_v4 }
 0x7f7   : > { %2924 = vrot.lane.b32.xlu0 %v2913_v60, %s3167_s16  ;;  %2929 = vrot.lane.b32.xlu1 %v2913_v60, %s3168_s17 }
 0x7fb   : > { %2934 = vrot.lane.b32.xlu0 %v2933_v62, %s3165_s14  ;;  %2939 = vrot.lane.b32.xlu1 %v2933_v62, %s3166_s15 }
 0x7ff   : > { %2944 = vrot.lane.b32.xlu0 %v2933_v62, %s3167_s16  ;;  %2949 = vrot.lane.b32.xlu1 %v2948_v5, %s3165_s14 }
 0x803   : > { %2959 = vrot.lane.b32.xlu0 %v2913_v60, %s3169_s18  ;;  %2954 = vrot.lane.b32.xlu1 %v2933_v62, %s3168_s17 }
 0x807   : > { %2964 = vrot.lane.b32.xlu0 %v2948_v5, %s3166_s15  ;;  %2974 = vrot.lane.b32.xlu1 %v2948_v5, %s3167_s16 }
 0x80b   : > { %2969 = vrot.lane.b32.xlu0 %v2933_v62, %s3169_s18  ;;  %2979 = vrot.lane.b32.xlu1 %v2913_v60, %s3170_s19 }
 0x80f   : > { %2984 = vrot.lane.b32.xlu0 %v2948_v5, %s3168_s17  ;;  %2989 = vrot.lane.b32.xlu1 %v2948_v5, %s3169_s18 }
 0x813   : > { %2999 = vrot.lane.b32.xlu0 %v2913_v60, %s3171_s20  ;;  %2994 = vrot.lane.b32.xlu1 %v2933_v62, %s3170_s19 }
 0x817   : > { %3004 = vrot.lane.b32.xlu0 %v2948_v5, %s3170_s19  ;;  %3014 = vrot.lane.b32.xlu1 %v2948_v5, %s3171_s20 }
 0x81b   : > { %3009 = vrot.lane.b32.xlu0 %v2933_v62, %s3171_s20  ;;  %3019 = vrot.lane.b32.xlu1 %v2913_v60, %s3172_s27 }
 0x81f   : > { %3024 = vrot.lane.b32.xlu0 %v2948_v5, %s3172_s27  ;;  %3029 = vrot.lane.b32.xlu1 %v2933_v62, %s3172_s27 }
 0x865   : > { %v2915_v7 = vpop.permute.xlu0 %2914  ;;  %v2920_v8 = vpop.permute.xlu1 %2919 }
 0x866   : > { %v2917_v13 = vunpack.i.h.bf16 %v2915_v7  ;;  %v2916_v14 = vunpack.i.l.bf16 %v2915_v7  ;;  %v2922_v32 = vunpack.i.h.bf16 %v2920_v8  ;;  %v2921_v34 = vunpack.i.l.bf16 %v2920_v8 }
 0x868   : > { %v1598_v24 = vsel %vm737_vm9, %v2916_v14, %v2917_v13  ;;  %v1478_v47 = vsel %vm612_vm10, %v2921_v34, %v2922_v32 }
 0x869   : > { %v2925_v9 = vpop.permute.xlu0 %2924  ;;  %v3627_v10 = vpop.permute.xlu1 %2929 }
 0x86a   : > { %v2927_v36 = vunpack.i.h.bf16 %v2925_v9  ;;  %v2926_v37 = vunpack.i.l.bf16 %v2925_v9  ;;  %v2932_v60 = vunpack.i.h.bf16 %v3627_v10  ;;  %v2931_v3 = vunpack.i.l.bf16 %v3627_v10 }
 0x86c   : > { %v1502_v58 = vsel %vm637_vm13, %v2926_v37, %v2927_v36 }
 0x86d   : > { %v2935_v11 = vpop.permute.xlu0 %2934  ;;  %v2940_v12 = vpop.permute.xlu1 %2939 }
 0x86e   : > { %v2936_v15 = vunpack.i.l.bf16 %v2935_v11  ;;  %v2937_v19 = vunpack.i.h.bf16 %v2935_v11  ;;  %v2941_v35 = vunpack.i.l.bf16 %v2940_v12  ;;  %v2942_v38 = vunpack.i.h.bf16 %v2940_v12 }
 0x870   : > { %v1597_v16 = vsel %vm737_vm9, %v2936_v15, %v2916_v14  ;;  %v1477_v48 = vsel %vm612_vm10, %v2941_v35, %v2921_v34 }
 0x871   : > { %v2945_v17 = vpop.permute.xlu0 %2944  ;;  %v2950_v18 = vpop.permute.xlu1 %2949 }
 0x872   : > { %v2952_v20 = vunpack.i.h.bf16 %v2950_v18  ;;  %v2951_v21 = vunpack.i.l.bf16 %v2950_v18  ;;  %v2947_v49 = vunpack.i.h.bf16 %v2945_v17  ;;  %v2946_v50 = vunpack.i.l.bf16 %v2945_v17 }
 0x873   : > { %v1618_v17 = vsel %vm758_vm1, %v2931_v3, %v2932_v60 }
 0x874   : > { %v1599_v23 = vsel %vm737_vm9, %v2937_v19, %v2951_v21  ;;  %v1600_v25 = vsel %vm737_vm9, %v2951_v21, %v2952_v20  ;;  %v1501_v62 = vsel %vm637_vm13, %v2946_v50, %v2926_v37 }
 0x875   : > { %v2555_v27 = vpack.c.bf16 %v1599_v23, %v1597_v16  ;;  %v3633_v29 = vpop.permute.xlu0 %2959  ;;  %v2955_v30 = vpop.permute.xlu1 %2954  ;;  %v2553_v31 = vpack.c.bf16 %v1600_v25, %v1598_v24 }
 0x876   : > { %v2956_v61 = vunpack.i.l.bf16 %v2955_v30  ;;  %v2962_v63 = vunpack.i.h.bf16 %v3633_v29  ;;  %v2961_v5 = vunpack.i.l.bf16 %v3633_v29  ;;  %v2957_v6 = vunpack.i.h.bf16 %v2955_v30 }
 0x877   : > { %2554 = vmatprep.subr.bf16.mxu0 %v2553_v31 }
 0x878   : > { %2556 = vmatpush1.bf16.msra.mxu0 %v2555_v27  ;;  %v1617_v14 = vsel %vm758_vm1, %v2956_v61, %v2931_v3  ;;  %v1526_v27 = vsel %vm662_vm4, %v2961_v5, %v2962_v63 }
 0x879   : > { %v2965_v40 = vpop.permute.xlu0 %2964  ;;  %v2975_v44 = vpop.permute.xlu1 %2974 }
 0x87a   : > { %v2967_v1 = vunpack.i.h.bf16 %v2965_v40  ;;  %v2966_v2 = vunpack.i.l.bf16 %v2965_v40  ;;  %v2977_v45 = vunpack.i.h.bf16 %v2975_v44  ;;  %v2976_v46 = vunpack.i.l.bf16 %v2975_v44 }
 0x87c   : > { %v1479_v51 = vsel %vm612_vm10, %v2942_v38, %v2966_v2  ;;  %v1480_v52 = vsel %vm612_vm10, %v2966_v2, %v2967_v1  ;;  %v1504_v53 = vsel %vm637_vm13, %v2976_v46, %v2977_v45  ;;  %v1503_v59 = vsel %vm637_vm13, %v2947_v49, %v2976_v46 }
 0x87d   : > { %v2557_v54 = vpack.c.bf16 %v1480_v52, %v1478_v47  ;;  %v2560_v55 = vpack.c.bf16 %v1479_v51, %v1477_v48  ;;  %v2970_v56 = vpop.permute.xlu0 %2969  ;;  %v2980_v57 = vpop.permute.xlu1 %2979  ;;  %v2563_v4 = vpack.c.bf16 %v1504_v53, %v1502_v58  ;;  %v2566_v7 = vpack.c.bf16 %v1503_v59, %v1501_v62 }
 0x87e   : > { %v2972_v15 = vunpack.i.h.bf16 %v2970_v56  ;;  %v2971_v18 = vunpack.i.l.bf16 %v2970_v56  ;;  %v2982_v30 = vunpack.i.h.bf16 %v2980_v57  ;;  %v2981_v31 = vunpack.i.l.bf16 %v2980_v57 }
 0x87f   : > { %2559 = vmatprep.subr.msk.bf16.mxu0 %vm3374_vm14, %v2557_v54 }
 0x880   : > { %2562 = vmatpush1.bf16.msk.msra.mxu0 %vm3381_vm15, %v2560_v55  ;;  %v1525_v34 = vsel %vm662_vm4, %v2971_v18, %v2961_v5  ;;  %v1550_v48 = vsel %vm3849_vm6, %v2981_v31, %v2982_v30  ;;  %v1332_v18 = vld [vmem:[%s3841_s7] sm:$0xff]  ;;  %v1720_v30 = vld [vmem:[%s3842_s8 + $0x8] sm:$0xff] }
 0x881   : > { %v2985_v8 = vpop.permute.xlu0 %2984  ;;  %v2990_v9 = vpop.permute.xlu1 %2989  ;;  %2565 = vmatprep.subr.msk.bf16.mxu0 %vm3302_vm5, %v2563_v4 }
 0x882   : > { %v2987_v10 = vunpack.i.h.bf16 %v2985_v8  ;;  %v2986_v11 = vunpack.i.l.bf16 %v2985_v8  ;;  %v2992_v12 = vunpack.i.h.bf16 %v2990_v9  ;;  %v2991_v13 = vunpack.i.l.bf16 %v2990_v9 }
 0x884   : > { %v1619_v19 = vsel %vm758_vm1, %v2957_v6, %v2986_v11  ;;  %v1528_v20 = vsel %vm662_vm4, %v2991_v13, %v2992_v12  ;;  %2568 = vmatpush1.bf16.msk.msra.mxu0 %vm3310_vm7, %v2566_v7  ;;  %v1620_v21 = vsel %vm758_vm1, %v2986_v11, %v2987_v10  ;;  %v1527_v29 = vsel %vm662_vm4, %v2972_v15, %v2991_v13 }
 0x885   : > { %v2571_v16 = vpack.c.bf16 %v1619_v19, %v1617_v14  ;;  %v3000_v23 = vpop.permute.xlu0 %2999  ;;  %v2995_v24 = vpop.permute.xlu1 %2994  ;;  %v2569_v25 = vpack.c.bf16 %v1620_v21, %v1618_v17  ;;  %v2573_v32 = vpack.c.bf16 %v1528_v20, %v1526_v27  ;;  %v2576_v36 = vpack.c.bf16 %v1527_v29, %v1525_v34  ;;  %v1719_v29 = vld [vmem:[%s3842_s8] sm:$0xff] }
 0x886   : > { %v2996_v35 = vunpack.i.l.bf16 %v2995_v24  ;;  %v3002_v37 = vunpack.i.h.bf16 %v3000_v23  ;;  %v3001_v38 = vunpack.i.l.bf16 %v3000_v23  ;;  %v2997_v40 = vunpack.i.h.bf16 %v2995_v24 }
 0x887   : > { %2570 = vmatprep.subr.bf16.mxu0 %v2569_v25 }
 0x888   : > { %2572 = vmatpush1.bf16.msra.mxu0 %v2571_v16  ;;  %v1549_v49 = vsel %vm3849_vm6, %v2996_v35, %v2981_v31  ;;  %v1638_v59 = vsel %vm3850_vm11, %v3001_v38, %v3002_v37 }
 0x889   : > { %v3005_v44 = vpop.permute.xlu0 %3004  ;;  %v3015_v1 = vpop.permute.xlu1 %3014  ;;  %2575 = vmatprep.subr.msk.bf16.mxu0 %vm3374_vm14, %v2573_v32 }
 0x88a   : > { %v3007_v2 = vunpack.i.h.bf16 %v3005_v44  ;;  %v3006_v45 = vunpack.i.l.bf16 %v3005_v44  ;;  %v3017_v46 = vunpack.i.h.bf16 %v3015_v1  ;;  %v3016_v47 = vunpack.i.l.bf16 %v3015_v1 }
 0x88c   : > { %v1551_v50 = vsel %vm3849_vm6, %v2997_v40, %v3006_v45  ;;  %v1552_v51 = vsel %vm3849_vm6, %v3006_v45, %v3007_v2  ;;  %2578 = vmatpush1.bf16.msk.msra.mxu0 %vm3381_vm15, %v2576_v36  ;;  %v1640_v52 = vsel %vm3850_vm11, %v3016_v47, %v3017_v46  ;;  %vm3865_vm6 = vmmov %vm3863_vm0 }
 0x88d   : > { %v2579_v53 = vpack.c.bf16 %v1552_v51, %v1550_v48  ;;  %v2582_v54 = vpack.c.bf16 %v1551_v50, %v1549_v49  ;;  %v3010_v55 = vpop.permute.xlu0 %3009  ;;  %v3020_v56 = vpop.permute.xlu1 %3019  ;;  %v2585_v60 = vpack.c.bf16 %v1640_v52, %v1638_v59 }
 0x88e   : > { %v3012_v57 = vunpack.i.h.bf16 %v3010_v55  ;;  %v3011_v58 = vunpack.i.l.bf16 %v3010_v55  ;;  %v3022_v4 = vunpack.i.h.bf16 %v3020_v56  ;;  %v3021_v62 = vunpack.i.l.bf16 %v3020_v56  ;;  %v1722_v55 = vld [vmem:[%s3843_s9 + $0x8] sm:$0xff] }
 0x88f   : > { %2581 = vmatprep.subr.msk.bf16.mxu0 %vm3302_vm5, %v2579_v53 }
 0x890   : > { %v1637_v3 = vsel %vm3850_vm11, %v3011_v58, %v3001_v38  ;;  %v1639_v61 = vsel %vm3850_vm11, %v3012_v57, %v3016_v47  ;;  %2584 = vmatpush1.bf16.msk.msra.mxu0 %vm3310_vm7, %v2582_v54  ;;  %v1574_v11 = vsel %vm3863_vm0, %v3021_v62, %v3022_v4  ;;  %vm3866_vm11 = vmmov %vm3863_vm0 }
 0x891   : > { %v2587_v63 = vpack.c.bf16 %v1639_v61, %v1637_v3  ;;  %v3025_v5 = vpop.permute.xlu0 %3024  ;;  %v3030_v6 = vpop.permute.xlu1 %3029  ;;  %2586 = vmatprep.subr.bf16.mxu0 %v2585_v60 }
 0x892   : > { %v3027_v7 = vunpack.i.h.bf16 %v3025_v5  ;;  %v3026_v8 = vunpack.i.l.bf16 %v3025_v5  ;;  %v3032_v9 = vunpack.i.h.bf16 %v3030_v6  ;;  %v3031_v10 = vunpack.i.l.bf16 %v3030_v6 }
 0x894   : > { %v1576_v12 = vsel %vm3864_vm12, %v3026_v8, %v3027_v7  ;;  %v1575_v13 = vsel %vm3865_vm6, %v3032_v9, %v3026_v8  ;;  %v1573_v14 = vsel %vm3866_vm11, %v3031_v10, %v3021_v62  ;;  %2588 = vmatpush1.bf16.msra.mxu0 %v2587_v63  ;;  %vm3875_vm11 = vmmov %vm3863_vm0 }
 0x895   : > { %v2589_v15 = vpack.c.bf16 %v1576_v12, %v1574_v11  ;;  %v2592_v17 = vpack.c.bf16 %v1575_v13, %v1573_v14  ;;  %vm3877_vm12 = vmmov %vm3863_vm0 }
 0x897   : > { %2591 = vmatprep.subr.msk.bf16.mxu0 %vm3374_vm14, %v2589_v15 }
 0x898   : > { %2594 = vmatpush1.bf16.msk.msra.mxu0 %vm3381_vm15, %v2592_v17 }
 0x89b   : > { %1713 = vmatmul.mubr.f32.vlgmr.msra.gmra.mrb[10].mxu0 %v1332_v18 }
 0x89c   : > { %2176 = vmatprep.mubr.f32.mxu0 %v3163_v0 }
 0x96e   : > { %v1714_v19 = vpop.f32.mrb[10].mxu0 }
 0x96f   : > { %v1723_v20 = vmax.f32 %v1714_v19, 0.0  ;;  %v1716_v21 = vpop.f32.mrb[11].mxu0  ;;  %v2649_v24 = vpack.c.bf16 %v1714_v19, %v3564_v39 }
 0x970   : > { %v1724_v16 = vmax.f32 %v1716_v21, 0.0  ;;  %v2647_v23 = vpack.c.bf16 %v1716_v21, %v3567_v41 }
 0x971   : > { %v2597_v27 = vpack.c.bf16 %v1723_v20, %v1334_v43 }
 0x972   : > { %v2595_v25 = vpack.c.bf16 %v1724_v16, %v1335_v42  ;;  %2648 = vmatprep.subr.bf16.mxu0 %v2647_v23 }
 0x973   : > { %2650 = vmatpush1.bf16.msra.mxu0 %v2649_v24 }
 0x974   : > { %2596 = vmatprep.subr.bf16.mxu1 %v2595_v25 }
 0x975   : > { %2598 = vmatpush1.bf16.msra.mxu1 %v2597_v27 }
 0x978   : > { %2410 = vmatmul.mubr.msk.f32.vlgmr.msra.gmra.mrb[8].mxu1 %vm788_vm8, %v1719_v29 }
 0x979   : > { %1801 = vmatprep.mubr.f32.mxu1 %v3163_v0 }
 0x97c   : > { %2411 = vmatmul.mubr.msk.f32.gmra.mrb[10].mxu1 %vm788_vm8, %v1720_v30 }
 0x97d   : > { %2436 = vmatprep.mubr.msk.f32.mxu1 %vm788_vm8, %v1722_v55 }
 0xa4b   : > { %v1797_v42 = vpop.f32.mrb[8].mxu1 }
 0xa4c   : > { %v1808_v31 = vmax.f32 %v1797_v42, 0.0  ;;  %v1799_v43 = vpop.f32.mrb[9].mxu1 }
 0xa4d   : > { %v1809_v32 = vmax.f32 %v1799_v43, 0.0 }
 0xa4e   : > { %1816 = vrot.lane.b32.xlu0 %v1808_v31, %s3164_s13 }
 0xa4f   : > { %1818 = vrot.lane.b32.xlu1 %v1809_v32, %s3164_s13  ;;  %v1803_v34 = vpop.f32.mrb[10].mxu1 }
 0xa50   : > { %v1810_v35 = vmax.f32 %v1803_v34, 0.0  ;;  %v1805_v36 = vpop.f32.mrb[11].mxu1 }
 0xa51   : > { %v1811_v37 = vmax.f32 %v1805_v36, 0.0 }
 0xa52   : > { %1820 = vrot.lane.b32.xlu0 %v1810_v35, %s3164_s13 }
 0xa53   : > { %1822 = vrot.lane.b32.xlu1 %v1811_v37, %s3164_s13 }
 0xac0   : > { %v1817_v38 = vpop.permute.xlu0 %1816 }
 0xac1   : > { %1832 = vst.msk [vmem:[#allocation2] sm:$0xff] %vm569_vm2, %v1817_v38  ;;  %v1819_v40 = vpop.permute.xlu1 %1818 }
 0xac2   : > { %v1824_v44 = vsel %vm560_vm3, %v1817_v38, %v1819_v40  ;;  %1834 = vst.msk [vmem:[#allocation2 + $0x10] sm:$0xff] %vm560_vm3, %v1819_v40 }
 0xac4   : > { %v1821_v1 = vpop.permute.xlu0 %1820 }
 0xac5   : > { %1835 = vst.msk [vmem:[#allocation2 + $0x18] sm:$0xff] %vm569_vm2, %v1821_v1  ;;  %v1823_v2 = vpop.permute.xlu1 %1822  ;;  %vm3867_vm2 = vcmask 785408  }
 0xac6   : > { %v1825_v45 = vsel %vm560_vm3, %v1821_v1, %v1823_v2  ;;  %1837 = vst.msk [vmem:[#allocation2 + $0x28] sm:$0xff] %vm560_vm3, %v1823_v2  ;;  %vm3868_vm3 = vmmov %vm3867_vm2 }
 0xac7   : > { %v2599_v46 = vpack.c.bf16 %v1825_v45, %v1824_v44 }
 0xac8   : > { %v1838_v49 = vld [vmem:[#allocation2] sm:$0xff] }
 0xac9   : > { %v1846_v47 = vld [vmem:[#allocation2 + $0x10] sm:$0xff]  ;;  %2601 = vmatprep.subr.msk.bf16.mxu1 %vm3302_vm5, %v2599_v46 }
 0xaca   : > { %v3033_v48 = vpack.i.bf16 %v1846_v47, %v1824_v44 }
 0xacc   : > { %3034 = vrot.lane.b32.xlu0 %v3033_v48, %s3165_s14  ;;  %3039 = vrot.lane.b32.xlu1 %v3033_v48, %s3166_s15  ;;  %v1840_v50 = vld [vmem:[#allocation2 + $0x18] sm:$0xff] }
 0xacd   : > { %v2602_v51 = vpack.c.bf16 %v1840_v50, %v1838_v49  ;;  %v3053_v52 = vpack.i.bf16 %v1840_v50, %v1838_v49  ;;  %v1847_v53 = vld [vmem:[#allocation2 + $0x28] sm:$0xff] }
 0xace   : > { %v3068_v54 = vpack.i.bf16 %v1847_v53, %v1825_v45 }
 0xacf   : > { %2604 = vmatpush1.bf16.msk.msra.mxu1 %vm3310_vm7, %v2602_v51 }
 0xad0   : > { %3044 = vrot.lane.b32.xlu0 %v3033_v48, %s3167_s16  ;;  %3049 = vrot.lane.b32.xlu1 %v3033_v48, %s3168_s17 }
 0xad4   : > { %3054 = vrot.lane.b32.xlu0 %v3053_v52, %s3165_s14  ;;  %3059 = vrot.lane.b32.xlu1 %v3053_v52, %s3166_s15 }
 0xad8   : > { %3064 = vrot.lane.b32.xlu0 %v3053_v52, %s3167_s16  ;;  %3069 = vrot.lane.b32.xlu1 %v3068_v54, %s3165_s14 }
 0xadc   : > { %3079 = vrot.lane.b32.xlu0 %v3033_v48, %s3169_s18  ;;  %3074 = vrot.lane.b32.xlu1 %v3053_v52, %s3168_s17 }
 0xae0   : > { %3084 = vrot.lane.b32.xlu0 %v3068_v54, %s3166_s15  ;;  %3094 = vrot.lane.b32.xlu1 %v3068_v54, %s3167_s16 }
 0xae4   : > { %3089 = vrot.lane.b32.xlu0 %v3053_v52, %s3169_s18  ;;  %3099 = vrot.lane.b32.xlu1 %v3033_v48, %s3170_s19 }
 0xae8   : > { %3104 = vrot.lane.b32.xlu0 %v3068_v54, %s3168_s17  ;;  %3109 = vrot.lane.b32.xlu1 %v3068_v54, %s3169_s18 }
 0xaec   : > { %3119 = vrot.lane.b32.xlu0 %v3033_v48, %s3171_s20  ;;  %3114 = vrot.lane.b32.xlu1 %v3053_v52, %s3170_s19 }
 0xaf0   : > { %3124 = vrot.lane.b32.xlu0 %v3068_v54, %s3170_s19  ;;  %3134 = vrot.lane.b32.xlu1 %v3068_v54, %s3171_s20 }
 0xaf4   : > { %3129 = vrot.lane.b32.xlu0 %v3053_v52, %s3171_s20  ;;  %3139 = vrot.lane.b32.xlu1 %v3033_v48, %s3172_s27 }
 0xaf8   : > { %3144 = vrot.lane.b32.xlu0 %v3068_v54, %s3172_s27  ;;  %3149 = vrot.lane.b32.xlu1 %v3053_v52, %s3172_s27 }
 0xb3e   : > { %v3035_v56 = vpop.permute.xlu0 %3034  ;;  %v3040_v57 = vpop.permute.xlu1 %3039 }
 0xb3f   : > { %v3037_v61 = vunpack.i.h.bf16 %v3035_v56  ;;  %v3036_v4 = vunpack.i.l.bf16 %v3035_v56  ;;  %v3042_v18 = vunpack.i.h.bf16 %v3040_v57  ;;  %v3041_v19 = vunpack.i.l.bf16 %v3040_v57 }
 0xb41   : > { %v1987_v11 = vsel %vm737_vm9, %v3036_v4, %v3037_v61  ;;  %v1867_v31 = vsel %vm612_vm10, %v3041_v19, %v3042_v18 }
 0xb42   : > { %v3045_v58 = vpop.permute.xlu0 %3044  ;;  %v3748_v59 = vpop.permute.xlu1 %3049 }
 0xb43   : > { %v3047_v21 = vunpack.i.h.bf16 %v3045_v58  ;;  %v3046_v16 = vunpack.i.l.bf16 %v3045_v58  ;;  %v3052_v46 = vunpack.i.h.bf16 %v3748_v59  ;;  %v3051_v47 = vunpack.i.l.bf16 %v3748_v59 }
 0xb45   : > { %v1891_v2 = vsel %vm637_vm13, %v3046_v16, %v3047_v21 }
 0xb46   : > { %v3055_v60 = vpop.permute.xlu0 %3054  ;;  %v3060_v3 = vpop.permute.xlu1 %3059 }
 0xb47   : > { %v3056_v62 = vunpack.i.l.bf16 %v3055_v60  ;;  %v3057_v6 = vunpack.i.h.bf16 %v3055_v60  ;;  %v3061_v20 = vunpack.i.l.bf16 %v3060_v3  ;;  %v3062_v23 = vunpack.i.h.bf16 %v3060_v3 }
 0xb49   : > { %v1986_v9 = vsel %vm737_vm9, %v3056_v62, %v3036_v4  ;;  %v1866_v43 = vsel %vm612_vm10, %v3061_v20, %v3041_v19  ;;  %v2007_v4 = vsel %vm758_vm1, %v3051_v47, %v3052_v46 }
 0xb4a   : > { %v3065_v63 = vpop.permute.xlu0 %3064  ;;  %v3070_v5 = vpop.permute.xlu1 %3069 }
 0xb4b   : > { %v3072_v7 = vunpack.i.h.bf16 %v3070_v5  ;;  %v3071_v8 = vunpack.i.l.bf16 %v3070_v5  ;;  %v3067_v32 = vunpack.i.h.bf16 %v3065_v63  ;;  %v3066_v34 = vunpack.i.l.bf16 %v3065_v63 }
 0xb4d   : > { %v1988_v10 = vsel %vm737_vm9, %v3057_v6, %v3071_v8  ;;  %v1989_v12 = vsel %vm737_vm9, %v3071_v8, %v3072_v7  ;;  %v1890_v50 = vsel %vm637_vm13, %v3066_v34, %v3046_v16  ;;  %vm3869_vm9 = vmmov %vm3867_vm2 }
 0xb4e   : > { %v2607_v13 = vpack.c.bf16 %v1988_v10, %v1986_v9  ;;  %v3754_v14 = vpop.permute.xlu0 %3079  ;;  %v3075_v15 = vpop.permute.xlu1 %3074  ;;  %v2605_v17 = vpack.c.bf16 %v1989_v12, %v1987_v11 }
 0xb4f   : > { %v3076_v48 = vunpack.i.l.bf16 %v3075_v15  ;;  %v3082_v51 = vunpack.i.h.bf16 %v3754_v14  ;;  %v3081_v52 = vunpack.i.l.bf16 %v3754_v14  ;;  %v3077_v53 = vunpack.i.h.bf16 %v3075_v15 }
 0xb50   : > { %2606 = vmatprep.subr.bf16.mxu1 %v2605_v17 }
 0xb51   : > { %2608 = vmatpush1.bf16.msra.mxu1 %v2607_v13  ;;  %v2006_v3 = vsel %vm758_vm1, %v3076_v48, %v3051_v47  ;;  %v1915_v11 = vsel %vm662_vm4, %v3081_v52, %v3082_v51 }
 0xb52   : > { %v3085_v24 = vpop.permute.xlu0 %3084  ;;  %v3095_v25 = vpop.permute.xlu1 %3094 }
 0xb53   : > { %v3087_v27 = vunpack.i.h.bf16 %v3085_v24  ;;  %v3086_v29 = vunpack.i.l.bf16 %v3085_v24  ;;  %v3097_v30 = vunpack.i.h.bf16 %v3095_v25  ;;  %v3096_v42 = vunpack.i.l.bf16 %v3095_v25 }
 0xb55   : > { %v1868_v35 = vsel %vm612_vm10, %v3062_v23, %v3086_v29  ;;  %v1869_v36 = vsel %vm612_vm10, %v3086_v29, %v3087_v27  ;;  %v1893_v37 = vsel %vm637_vm13, %v3096_v42, %v3097_v30  ;;  %v1892_v45 = vsel %vm637_vm13, %v3067_v32, %v3096_v42  ;;  %vm3870_vm10 = vmmov %vm3867_vm2 }
 0xb56   : > { %v2609_v38 = vpack.c.bf16 %v1869_v36, %v1867_v31  ;;  %v2612_v40 = vpack.c.bf16 %v1868_v35, %v1866_v43  ;;  %v3090_v44 = vpop.permute.xlu0 %3089  ;;  %v3100_v1 = vpop.permute.xlu1 %3099  ;;  %v2615_v49 = vpack.c.bf16 %v1893_v37, %v1891_v2  ;;  %v2618_v54 = vpack.c.bf16 %v1892_v45, %v1890_v50 }
 0xb57   : > { %v3092_v61 = vunpack.i.h.bf16 %v3090_v44  ;;  %v3091_v62 = vunpack.i.l.bf16 %v3090_v44  ;;  %v3102_v13 = vunpack.i.h.bf16 %v3100_v1  ;;  %v3101_v14 = vunpack.i.l.bf16 %v3100_v1 }
 0xb58   : > { %2611 = vmatprep.subr.msk.bf16.mxu1 %vm3374_vm14, %v2609_v38  ;;  %vm3871_vm13 = vcmask 777216  }
 0xb59   : > { %2614 = vmatpush1.bf16.msk.msra.mxu1 %vm3381_vm15, %v2612_v40  ;;  %v1914_v17 = vsel %vm662_vm4, %v3091_v62, %v3081_v52  ;;  %v1939_v42 = vsel %vm3867_vm2, %v3101_v14, %v3102_v13 }
 0xb5a   : > { %v3105_v55 = vpop.permute.xlu0 %3104  ;;  %v3110_v56 = vpop.permute.xlu1 %3109  ;;  %2617 = vmatprep.subr.msk.bf16.mxu1 %vm3302_vm5, %v2615_v49 }
 0xb5b   : > { %v3107_v57 = vunpack.i.h.bf16 %v3105_v55  ;;  %v3106_v58 = vunpack.i.l.bf16 %v3105_v55  ;;  %v3112_v59 = vunpack.i.h.bf16 %v3110_v56  ;;  %v3111_v60 = vunpack.i.l.bf16 %v3110_v56 }
 0xb5d   : > { %v2008_v63 = vsel %vm758_vm1, %v3077_v53, %v3106_v58  ;;  %v1917_v5 = vsel %vm662_vm4, %v3111_v60, %v3112_v59  ;;  %2620 = vmatpush1.bf16.msk.msra.mxu1 %vm3310_vm7, %v2618_v54  ;;  %v2009_v6 = vsel %vm758_vm1, %v3106_v58, %v3107_v57  ;;  %v1916_v12 = vsel %vm662_vm4, %v3092_v61, %v3111_v60  ;;  %vm3872_vm1 = vmmov %vm3871_vm13  ;;  %v1721_v60 = vld [vmem:[%s3843_s9] sm:$0xff] }
 0xb5e   : > { %v2623_v7 = vpack.c.bf16 %v2008_v63, %v2006_v3  ;;  %v3120_v8 = vpop.permute.xlu0 %3119  ;;  %v3115_v9 = vpop.permute.xlu1 %3114  ;;  %v2621_v10 = vpack.c.bf16 %v2009_v6, %v2007_v4  ;;  %v2625_v15 = vpack.c.bf16 %v1917_v5, %v1915_v11  ;;  %v2628_v19 = vpack.c.bf16 %v1916_v12, %v1914_v17  ;;  %vm3873_vm4 = vmmov %vm3872_vm1  ;;  %v2108_v4 = vld [vmem:[%s3844_s10] sm:$0xff] }
 0xb5f   : > { %v3116_v18 = vunpack.i.l.bf16 %v3115_v9  ;;  %v3122_v20 = vunpack.i.h.bf16 %v3120_v8  ;;  %v3121_v21 = vunpack.i.l.bf16 %v3120_v8  ;;  %v3117_v16 = vunpack.i.h.bf16 %v3115_v9  ;;  %vm3874_vm6 = vmmov %vm3872_vm1  ;;  %v3153_v8 = vld [vmem:[%s3257_s26] sm:$0xff] }
 0xb60   : > { %2622 = vmatprep.subr.bf16.mxu1 %v2621_v10 }
 0xb61   : > { %2624 = vmatpush1.bf16.msra.mxu1 %v2623_v7  ;;  %v1938_v31 = vsel %vm3868_vm3, %v3116_v18, %v3101_v14  ;;  %v2027_v1 = vsel %vm3872_vm1, %v3121_v21, %v3122_v20  ;;  %v2185_v7 = vld [vmem:[%s3845_s11] sm:$0xff] }
 0xb62   : > { %v3125_v23 = vpop.permute.xlu0 %3124  ;;  %v3135_v24 = vpop.permute.xlu1 %3134  ;;  %2627 = vmatprep.subr.msk.bf16.mxu1 %vm3374_vm14, %v2625_v15 }
 0xb63   : > { %v3127_v25 = vunpack.i.h.bf16 %v3125_v23  ;;  %v3126_v27 = vunpack.i.l.bf16 %v3125_v23  ;;  %v3137_v29 = vunpack.i.h.bf16 %v3135_v24  ;;  %v3136_v30 = vunpack.i.l.bf16 %v3135_v24 }
 0xb65   : > { %v1940_v43 = vsel %vm3869_vm9, %v3117_v16, %v3126_v27  ;;  %v1941_v32 = vsel %vm3870_vm10, %v3126_v27, %v3127_v25  ;;  %2630 = vmatpush1.bf16.msk.msra.mxu1 %vm3381_vm15, %v2628_v19  ;;  %v2029_v34 = vsel %vm3871_vm13, %v3136_v30, %v3137_v29 }
 0xb66   : > { %v2631_v35 = vpack.c.bf16 %v1941_v32, %v1939_v42  ;;  %v2634_v36 = vpack.c.bf16 %v1940_v43, %v1938_v31  ;;  %v3130_v37 = vpop.permute.xlu0 %3129  ;;  %v3140_v38 = vpop.permute.xlu1 %3139  ;;  %v2637_v2 = vpack.c.bf16 %v2029_v34, %v2027_v1 }
 0xb67   : > { %v3132_v40 = vunpack.i.h.bf16 %v3130_v37  ;;  %v3131_v44 = vunpack.i.l.bf16 %v3130_v37  ;;  %v3142_v47 = vunpack.i.h.bf16 %v3140_v38  ;;  %v3141_v48 = vunpack.i.l.bf16 %v3140_v38 }
 0xb68   : > { %2633 = vmatprep.subr.msk.bf16.mxu1 %vm3302_vm5, %v2631_v35  ;;  %vm3876_vm5 = vmmov %vm3863_vm0 }
 0xb69   : > { %v2026_v45 = vsel %vm3873_vm4, %v3131_v44, %v3121_v21  ;;  %v2028_v46 = vsel %vm3874_vm6, %v3132_v40, %v3136_v30  ;;  %2636 = vmatpush1.bf16.msk.msra.mxu1 %vm3310_vm7, %v2634_v36  ;;  %v1963_v26 = vsel %vm3875_vm11, %v3141_v48, %v3142_v47  ;;  %vm3878_vm7 = vcmask 195584  }
 0xb6a   : > { %v2639_v49 = vpack.c.bf16 %v2028_v46, %v2026_v45  ;;  %v3145_v50 = vpop.permute.xlu0 %3144  ;;  %v3150_v51 = vpop.permute.xlu1 %3149  ;;  %2638 = vmatprep.subr.bf16.mxu1 %v2637_v2 }
 0xb6b   : > { %v3147_v52 = vunpack.i.h.bf16 %v3145_v50  ;;  %v3146_v53 = vunpack.i.l.bf16 %v3145_v50  ;;  %v3152_v54 = vunpack.i.h.bf16 %v3150_v51  ;;  %v3151_v55 = vunpack.i.l.bf16 %v3150_v51 }
 0xb6d   : > { %v1965_v56 = vsel %vm3876_vm5, %v3146_v53, %v3147_v52  ;;  %v1964_v57 = vsel %vm3877_vm12, %v3152_v54, %v3146_v53  ;;  %v1962_v58 = vsel %vm3863_vm0, %v3151_v55, %v3141_v48  ;;  %2640 = vmatpush1.bf16.msra.mxu1 %v2639_v49 }
 0xb6e   : > { %v2641_v59 = vpack.c.bf16 %v1965_v56, %v1963_v26  ;;  %v2644_v33 = vpack.c.bf16 %v1964_v57, %v1962_v58 }
 0xb70   : > { %2643 = vmatprep.subr.msk.bf16.mxu1 %vm3374_vm14, %v2641_v59 }
 0xb71   : > { %2646 = vmatpush1.bf16.msk.msra.mxu1 %vm3381_vm15, %v2644_v33 }
 0xb74   : > { %2102 = vmatmul.mubr.f32.vlgmr.msra.gmra.mrb[12].mxu1 %v1721_v60 }
 0xc47   : > { %v2103_v3 = vpop.f32.mrb[12].mxu1 }
 0xc48   : > { %v2105_v61 = vpop.f32.mrb[13].mxu1 }
 0xc49   : > { %2116 = vmatprep.subr.mxu0 %v2105_v61 }
 0xc4a   : > { %2117 = vmatpush1.msra.mxu0 %v2103_v3 }
 0xc4b   : > { %2437 = vmatmul.mubr.msk.f32.vlgmr.msra.gmra.mrb[12].mxu0 %vm3878_vm7, %v2108_v4 }
 0xc4c   : > { %2253 = vmatprep.mubr.f32.mxu0 %v3163_v0 }
 0xd1e   : > { %v2178_v22 = vpop.f32.mrb[12].mxu0 }
 0xd1f   : > { %v2183_v28 = vadd.f32 %v2178_v22, %v3564_v39  ;;  %v2180_v62 = vpop.f32.mrb[13].mxu0 }
 0xd20   : > { %v2184_v63 = vadd.f32 %v2180_v62, %v3567_v41 }
 0xd21   : > { %v2653_v6 = vpack.c.bf16 %v2183_v28, %v3564_v39 }
 0xd22   : > { %v2651_v5 = vpack.c.bf16 %v2184_v63, %v3567_v41  ;;  %v3154_v41 = vld [vmem:[%s3257_s26 + $0x8] sm:$0xff] }
 0xd24   : > { %2652 = vmatprep.subr.bf16.mxu0 %v2651_v5 }
 0xd25   : > { %2654 = vmatpush1.bf16.msra.mxu0 %v2653_v6 }
 0xd28   : > { %2438 = vmatmul.mubr.msk.f32.vlgmr.msra.gmra.mrb[14].mxu0 %vm788_vm8, %v2185_v7 }
 0xdfb   : > { %v2255_v0 = vpop.f32.mrb[14].mxu0 }
 0xdfc   : > { %v2260_v9 = vadd.f32 %v3153_v8, %v2255_v0  ;;  %v2257_v10 = vpop.f32.mrb[15].mxu0 }
 0xdfd   : > { %v2261_v11 = vadd.f32 %v3154_v41, %v2257_v10 }
 0xdfe   : > { %2262 = vst [vmem:[%s413_s28] sm:$0xff] %v2260_v9 }
 0xdff   : > { %2263 = vst [vmem:[%s413_s28 + $0x8] sm:$0xff] %v2261_v11 }
 0xe00 PF: > { %s22_s21 = sadd.s32 1, %s3161_s21  }
 0xe01   : > { %p19_p4 = scmp.ge.s32.totalorder %s22_s21, 4  }
 0xe03   :  { %21 = sbr.rel (!%p19_p4) target bundleno = 1 (0x1), region = 98 }

</bundles_post_ra>
